<compile_context>
chip_gen: v7x
topology: tpu7x:2x2x1
jax: 0.10.0
libtpu: 0.0.40
codegen_flags: <defaults>
</compile_context>

<pallas_src>
import functools

import jax
import jax.numpy as jnp
from jax import lax
from jax.experimental import pallas as pl
from jax.experimental.pallas import tpu as pltpu

POOL = 4  # MaxPool2d(kernel_size=4, stride=4)


# ------------------------------------------------------------------ fused kernel ----
def _fused_kernel(lhs_ref, a_ref, b1_ref, lh_ref, rr_ref, b2_ref, o_ref, *,
                  NH, DW, COUT, K2, NHOUT, WOUT, WOUT_PAD):
    # ---- conv1 (5x5, pad 2) + bias + ReLU: ONE MXU matmul over the K-stacked LHS ----
    acc = jnp.dot(lhs_ref[...], a_ref[...],
                  preferred_element_type=jnp.float32)              # (NH, DW)
    acc = jnp.maximum(acc + b1_ref[...], 0.0)

    # ---- 4x4 max pool, kept dilated.  Rolls run on the XLU.  Wrap-around and
    # cross-image contamination only ever land in junk rows (r % 4 != 0) / junk columns
    # (w % 4 != 0): those are multiplied by exact-zero columns of lh / rows of rr below.
    # (Requires H % 4 == 0 and W % 4 == 0 — asserted in the wrapper.)
    m = jnp.maximum(acc, pltpu.roll(acc, shift=NH - 1, axis=0))     # rows r, r+1
    m = jnp.maximum(m, pltpu.roll(m, shift=NH - 2, axis=0))         # rows r..r+3  (valid r%4==0)
    m = jnp.maximum(m, pltpu.roll(m, shift=DW - COUT, axis=1))      # cols w, w+1
    m = jnp.maximum(m, pltpu.roll(m, shift=DW - 2 * COUT, axis=1))  # cols w..w+3  (valid w%4==0)

    # ---- heatmap_conv (3x3, pad 1, COUT->1) fused with the bilinear upsample ----
    # All K2 W-taps are concatenated in rr, sharing one 128-lane MXU weight group.
    g = jnp.dot(m, rr_ref[...], preferred_element_type=jnp.float32)  # (NH, K2*WOUT)
    up = jnp.zeros((NHOUT, WOUT), jnp.float32)
    for dy in range(K2):
        up = up + jnp.dot(lh_ref[dy], g[:, dy * WOUT:(dy + 1) * WOUT],
                          preferred_element_type=jnp.float32)        # (NHOUT, WOUT)

    # conv bias commutes with the upsample because align_corners=True interpolation rows
    # sum to 1 (would break for other upsample modes).
    out = up + b2_ref[...]

    # lane-dense store: pad WOUT -> WOUT_PAD; the wrapper slices the pad back off.
    if WOUT_PAD > WOUT:
        out = jnp.concatenate(
            [out, jnp.zeros((NHOUT, WOUT_PAD - WOUT), jnp.float32)], axis=1)
    o_ref[...] = out


# ------------------------------------------------------------------------- glue ----
def _interp_matrix(out_size, in_size):
    """align_corners=True bilinear interpolation matrix, shape (out_size, in_size)."""
    if out_size == 1:
        src = jnp.zeros((1,), jnp.float32)
    else:
        src = jnp.arange(out_size, dtype=jnp.float32) * ((in_size - 1) / (out_size - 1))
    i0 = jnp.clip(jnp.floor(src).astype(jnp.int32), 0, in_size - 1)
    i1 = jnp.minimum(i0 + 1, in_size - 1)
    frac = src - i0.astype(jnp.float32)
    return ((1.0 - frac)[:, None] * jax.nn.one_hot(i0, in_size, dtype=jnp.float32)
            + frac[:, None] * jax.nn.one_hot(i1, in_size, dtype=jnp.float32))


def make_basic_cnn1(params, x_shape, heatmap_size):
    """One-time operand preparation; returns a jitted forward(x) that reuses them."""
    f32 = jnp.float32
    w1 = params["w1"].astype(f32)
    b1 = params["b1"].astype(f32)
    w2 = params["w2"].astype(f32)
    b2 = params["b2"].astype(f32)

    N, CIN, H, W = x_shape
    COUT, K1 = w1.shape[0], w1.shape[-1]
    K2 = w2.shape[-1]
    P1, P2 = K1 // 2, K2 // 2
    assert H % POOL == 0 and W % POOL == 0 and K1 % 2 == 1 and K2 % 2 == 1
    Hp, Wp = H // POOL, W // POOL
    Hout, Wout = heatmap_size
    WI = W + 2 * P1                     # padded input width
    DW = W * COUT                       # conv1 accumulator lane width (lane = w*COUT + co)
    KDIM = K1 * WI * CIN                # stacked contraction dim for conv1
    NH = N * H                          # both images stacked on sublanes
    NHOUT = N * Hout
    WOUT_PAD = ((Wout + 127) // 128) * 128

    # conv1 as ONE banded matrix A[(dy*WI + u)*CIN + ci, w*COUT + co] = w1[co, ci, dy, dx]
    # with u = w + dx.
    w1k = jnp.transpose(w1, (2, 3, 1, 0))                                  # (K1,K1,CIN,COUT)
    E = jnp.stack([jnp.eye(WI, W, k=-dx, dtype=f32) for dx in range(K1)])  # (K1, WI, W)
    A = jnp.einsum("xuw,yxic->yuiwc", E, w1k).reshape(KDIM, DW)
    b1t = jnp.tile(b1, W).reshape(1, DW)                                   # bias per lane

    # heatmap_conv folded into the bilinear upsample.
    w2k = jnp.transpose(w2[0], (1, 2, 0))                                  # (K2, K2, COUT)
    Rh = _interp_matrix(Hout, Hp)                                          # (Hout, Hp)
    Rw = _interp_matrix(Wout, Wp)                                          # (Wout, Wp)

    # W side: Rr[dy][POOL*COUT*q + co, j] = sum_dx w2k[dy,dx,co] * Rw[j, q + P2 - dx];
    # every other row is exactly zero -> kills the junk columns of the dilated pooled map.
    T = jnp.stack([jnp.eye(Wp, k=P2 - dx, dtype=f32) @ Rw.T for dx in range(K2)])
    M = jnp.einsum("ydc,dqj->yqcj", w2k, T)                                # (K2,Wp,COUT,Wout)
    M = jnp.pad(M, ((0, 0), (0, 0), (0, POOL * COUT - COUT), (0, 0)))
    Rr = M.reshape(K2, DW, Wout)
    rr = jnp.transpose(Rr, (1, 0, 2)).reshape(DW, K2 * Wout)               # all taps, 1 group

    # H side: Lh[dy][i, p] = Rh[i, p + P2 - dy]; dilate (select sublane 4p) and make it
    # block-diagonal across the N sublane-stacked images.  Zero columns kill junk rows.
    Lh = jnp.stack([Rh @ jnp.eye(Hp, k=dy - P2, dtype=f32) for dy in range(K2)])
    S = jnp.zeros((Hp, H), f32).at[jnp.arange(Hp), POOL * jnp.arange(Hp)].set(1.0)
    Lh_dil = jnp.einsum("yip,pr->yir", Lh, S)                              # (K2, Hout, H)
    lh = jnp.stack([jnp.kron(jnp.eye(N, dtype=f32), Lh_dil[dy]) for dy in range(K2)])

    b2k = b2.reshape(1, 1)

    kernel = functools.partial(_fused_kernel, NH=NH, DW=DW, COUT=COUT, K2=K2,
                               NHOUT=NHOUT, WOUT=Wout, WOUT_PAD=WOUT_PAD)
    vmem = pl.BlockSpec(memory_space=pltpu.MemorySpace.VMEM)
    pallas_fn = pl.pallas_call(
        kernel,
        out_shape=jax.ShapeDtypeStruct((NHOUT, WOUT_PAD), f32),
        in_specs=[vmem] * 6,
        out_specs=vmem,
    )

    @jax.jit
    def forward(x_nchw):
        # Build the row-shifted, K-stacked conv1 LHS in XLA (cheap gather on HBM):
        #   lhs[n*H + h, dy*WI*CIN + x*CIN + ci] = x_pad[n, h + dy, x, ci]
        xp = jnp.pad(jnp.transpose(x_nchw, (0, 2, 3, 1)).astype(f32),
                     ((0, 0), (P1, P1), (P1, P1), (0, 0)))
        xf = xp.reshape(N, H + 2 * P1, WI * CIN)
        lhs = jnp.concatenate([xf[:, dy:dy + H, :] for dy in range(K1)], axis=-1)
        lhs = lhs.reshape(NH, KDIM)
        out = pallas_fn(lhs, A, b1t, lh, rr, b2k)
        return out[:, :Wout].reshape(N, 1, Hout, Wout)      # NCHW (N, 1, Hout, Wout)

    return forward


# -------------------------------------------------------------- pure-JAX reference ----
def reference_forward(x_nchw, params, heatmap_size):
    w1, b1, w2, b2 = params["w1"], params["b1"], params["w2"], params["b2"]
    y = lax.conv_general_dilated(x_nchw, w1, (1, 1), ((2, 2), (2, 2)),
                                 dimension_numbers=("NCHW", "OIHW", "NCHW"))
    y = jnp.maximum(y + b1[None, :, None, None], 0.0)
    y = lax.reduce_window(y, -jnp.inf, lax.max, (1, 1, 4, 4), (1, 1, 4, 4), "VALID")
    y = lax.conv_general_dilated(y, w2, (1, 1), ((1, 1), (1, 1)),
                                 dimension_numbers=("NCHW", "OIHW", "NCHW"))
    y = y + b2[None, :, None, None]
    Hout, Wout = heatmap_size
    rh = _interp_matrix(Hout, y.shape[2])
    rw = _interp_matrix(Wout, y.shape[3])
    return jnp.einsum("oh,nchw,pw->ncop", rh, y, rw)


if __name__ == "__main__":
    key = jax.random.PRNGKey(0)
    k1, k2, k3, k4, k5 = jax.random.split(key, 5)

    N, CIN, H, W = 2, 1, 32, 32
    heatmap_size = (48, 40)

    params = dict(
        w1=0.1 * jax.random.normal(k1, (16, CIN, 5, 5), jnp.float32),   # conv1.weight (OIHW)
        b1=0.1 * jax.random.normal(k2, (16,), jnp.float32),             # conv1.bias
        w2=0.1 * jax.random.normal(k3, (1, 16, 3, 3), jnp.float32),     # heatmap_conv.weight
        b2=0.1 * jax.random.normal(k4, (1,), jnp.float32),              # heatmap_conv.bias
    )
    x = jax.random.normal(k5, (N, CIN, H, W), jnp.float32)

    forward = make_basic_cnn1(params, x.shape, heatmap_size)   # one-time operand prep
    out = jax.block_until_ready(forward(x))
    ref = jax.block_until_ready(reference_forward(x, params, heatmap_size))

    assert out.shape == (N, 1, heatmap_size[0], heatmap_size[1]), out.shape
    err = float(jnp.max(jnp.abs(out - ref)))
    assert jnp.allclose(out, ref, atol=2e-4, rtol=2e-4), err
    print("KERNEL_OK")
</pallas_src>

<mosaic_0001>
module attributes {stable_mosaic.version = 11 : i64} {
  func.func @_fused_kernel(%arg0: memref<64x180xf32, #tpu.memory_space<vmem>>, %arg1: memref<180x512xf32, #tpu.memory_space<vmem>>, %arg2: memref<1x512xf32, #tpu.memory_space<vmem>>, %arg3: memref<3x96x64xf32, #tpu.memory_space<vmem>>, %arg4: memref<512x120xf32, #tpu.memory_space<vmem>>, %arg5: memref<1x1xf32, #tpu.memory_space<vmem>>, %arg6: memref<96x128xf32, #tpu.memory_space<vmem>>) attributes {dimension_semantics = [], scalar_prefetch = 0 : i64, scratch_operands = 0 : i64, tpu.core_type = #tpu.core_type<tc>} {
    %c0 = arith.constant 0 : index
    %c0_0 = arith.constant 0 : index
    %0 = vector.load %arg0[%c0, %c0_0] : memref<64x180xf32, #tpu.memory_space<vmem>>, vector<64x180xf32>
    %c0_1 = arith.constant 0 : index
    %c0_2 = arith.constant 0 : index
    %1 = vector.load %arg1[%c0_1, %c0_2] : memref<180x512xf32, #tpu.memory_space<vmem>>, vector<180x512xf32>
    %cst = arith.constant dense<0.000000e+00> : vector<64x512xf32>
    %2 = tpu.matmul %0, %1, %cst {dimension_numbers = #tpu.dot_dimension_numbers<[1], [0], [0], [1], [0, 0, 1, 1], [], []>} : vector<64x180xf32>, vector<180x512xf32>, vector<64x512xf32> -> vector<64x512xf32>
    %c0_3 = arith.constant 0 : index
    %c0_4 = arith.constant 0 : index
    %3 = vector.load %arg2[%c0_3, %c0_4] : memref<1x512xf32, #tpu.memory_space<vmem>>, vector<1x512xf32>
    %4 = vector.broadcast %3 : vector<1x512xf32> to vector<64x512xf32>
    %5 = arith.addf %2, %4 : vector<64x512xf32>
    %cst_5 = arith.constant 0.000000e+00 : f32
    %6 = vector.broadcast %cst_5 : f32 to vector<64x512xf32>
    %7 = arith.maximumf %5, %6 : vector<64x512xf32>
    %c63_i32 = arith.constant 63 : i32
    %8 = tpu.dynamic_rotate %7 by %c63_i32 dim 0 : vector<64x512xf32>, i32 -> vector<64x512xf32>
    %9 = arith.maximumf %7, %8 : vector<64x512xf32>
    %c62_i32 = arith.constant 62 : i32
    %10 = tpu.dynamic_rotate %9 by %c62_i32 dim 0 : vector<64x512xf32>, i32 -> vector<64x512xf32>
    %11 = arith.maximumf %9, %10 : vector<64x512xf32>
    %c496_i32 = arith.constant 496 : i32
    %12 = tpu.dynamic_rotate %11 by %c496_i32 dim 1 : vector<64x512xf32>, i32 -> vector<64x512xf32>
    %13 = arith.maximumf %11, %12 : vector<64x512xf32>
    %c480_i32 = arith.constant 480 : i32
    %14 = tpu.dynamic_rotate %13 by %c480_i32 dim 1 : vector<64x512xf32>, i32 -> vector<64x512xf32>
    %15 = arith.maximumf %13, %14 : vector<64x512xf32>
    %c0_6 = arith.constant 0 : index
    %c0_7 = arith.constant 0 : index
    %16 = vector.load %arg4[%c0_6, %c0_7] : memref<512x120xf32, #tpu.memory_space<vmem>>, vector<512x120xf32>
    %cst_8 = arith.constant dense<0.000000e+00> : vector<64x120xf32>
    %17 = tpu.matmul %15, %16, %cst_8 {dimension_numbers = #tpu.dot_dimension_numbers<[1], [0], [0], [1], [0, 0, 1, 1], [], []>} : vector<64x512xf32>, vector<512x120xf32>, vector<64x120xf32> -> vector<64x120xf32>
    %cst_9 = arith.constant 0.000000e+00 : f32
    %18 = vector.broadcast %cst_9 : f32 to vector<96x40xf32>
    %c0_10 = arith.constant 0 : index
    %c0_11 = arith.constant 0 : index
    %c0_12 = arith.constant 0 : index
    %19 = vector.load %arg3[%c0_10, %c0_11, %c0_12] : memref<3x96x64xf32, #tpu.memory_space<vmem>>, vector<1x96x64xf32>
    %20 = vector.shape_cast %19 : vector<1x96x64xf32> to vector<96x64xf32>
    %21 = vector.extract_strided_slice %17 {offsets = [0, 0], sizes = [64, 40], strides = [1, 1]} : vector<64x120xf32> to vector<64x40xf32>
    %cst_13 = arith.constant dense<0.000000e+00> : vector<96x40xf32>
    %22 = tpu.matmul %20, %21, %cst_13 {dimension_numbers = #tpu.dot_dimension_numbers<[1], [0], [0], [1], [0, 0, 1, 1], [], []>} : vector<96x64xf32>, vector<64x40xf32>, vector<96x40xf32> -> vector<96x40xf32>
    %23 = arith.addf %18, %22 : vector<96x40xf32>
    %c1 = arith.constant 1 : index
    %c0_14 = arith.constant 0 : index
    %c0_15 = arith.constant 0 : index
    %24 = vector.load %arg3[%c1, %c0_14, %c0_15] : memref<3x96x64xf32, #tpu.memory_space<vmem>>, vector<1x96x64xf32>
    %25 = vector.shape_cast %24 : vector<1x96x64xf32> to vector<96x64xf32>
    %26 = vector.extract_strided_slice %17 {offsets = [0, 40], sizes = [64, 40], strides = [1, 1]} : vector<64x120xf32> to vector<64x40xf32>
    %cst_16 = arith.constant dense<0.000000e+00> : vector<96x40xf32>
    %27 = tpu.matmul %25, %26, %cst_16 {dimension_numbers = #tpu.dot_dimension_numbers<[1], [0], [0], [1], [0, 0, 1, 1], [], []>} : vector<96x64xf32>, vector<64x40xf32>, vector<96x40xf32> -> vector<96x40xf32>
    %28 = arith.addf %23, %27 : vector<96x40xf32>
    %c2 = arith.constant 2 : index
    %c0_17 = arith.constant 0 : index
    %c0_18 = arith.constant 0 : index
    %29 = vector.load %arg3[%c2, %c0_17, %c0_18] : memref<3x96x64xf32, #tpu.memory_space<vmem>>, vector<1x96x64xf32>
    %30 = vector.shape_cast %29 : vector<1x96x64xf32> to vector<96x64xf32>
    %31 = vector.extract_strided_slice %17 {offsets = [0, 80], sizes = [64, 40], strides = [1, 1]} : vector<64x120xf32> to vector<64x40xf32>
    %cst_19 = arith.constant dense<0.000000e+00> : vector<96x40xf32>
    %32 = tpu.matmul %30, %31, %cst_19 {dimension_numbers = #tpu.dot_dimension_numbers<[1], [0], [0], [1], [0, 0, 1, 1], [], []>} : vector<96x64xf32>, vector<64x40xf32>, vector<96x40xf32> -> vector<96x40xf32>
    %33 = arith.addf %28, %32 : vector<96x40xf32>
    %c0_20 = arith.constant 0 : index
    %c0_21 = arith.constant 0 : index
    %34 = vector.load %arg5[%c0_20, %c0_21] : memref<1x1xf32, #tpu.memory_space<vmem>>, vector<1x1xf32>
    %35 = vector.broadcast %34 : vector<1x1xf32> to vector<96x40xf32>
    %36 = arith.addf %33, %35 : vector<96x40xf32>
    %cst_22 = arith.constant 0.000000e+00 : f32
    %37 = vector.broadcast %cst_22 : f32 to vector<96x88xf32>
    %38 = tpu.concatenate %36, %37 in 1 : vector<96x40xf32>, vector<96x88xf32> -> vector<96x128xf32>
    %c0_23 = arith.constant 0 : index
    %c0_24 = arith.constant 0 : index
    %39 = vector.load %arg6[%c0_23, %c0_24] : memref<96x128xf32, #tpu.memory_space<vmem>>, vector<96x128xf32>
    tpu.vector_store %arg6[%c0_23, %c0_24], %38 {strides = array<i32>} : memref<96x128xf32, #tpu.memory_space<vmem>>, vector<96x128xf32>,
    return
  }
}

</mosaic_0001>

<bundles_post_ra>
// kernel: forward.1
= control target key start
LH: loop header
LB: loop body
LE: loop exit
PB: predicated region body
PF: predicated region fallthrough
CT: control target
= control target key end

     0   :  { %s4415_s0 = inlined_call_operand.vmem [shape: f32[64,180], index: 0, kind: input, shape index: {}]   ;;  %s4416_s1 = inlined_call_operand.vmem [shape: f32[180,512], index: 1, kind: input, shape index: {}]   ;;  %s4417_s2 = inlined_call_operand.vmem [shape: f32[1,512], index: 2, kind: input, shape index: {}]   ;;  %s4418_s3 = inlined_call_operand.hbm [shape: f32[3,96,64], index: 3, kind: input, shape index: {}]   ;;  %s4419_s4 = inlined_call_operand.vmem [shape: f32[512,120], index: 4, kind: input, shape index: {}]   ;;  %s4420_s5 = inlined_call_operand.<no memory space> [shape: f32[1,1], index: 5, kind: input, shape index: {}]   ;;  %s4421_s6 = inlined_call_operand.vmem [shape: f32[96,128], index: 6, kind: output, shape index: {}]  }
   0x1   :  { %v11_v0 = vstv %s4420_s5 }
   0x2   :  { %12 = vst [vmem:[#allocation2] sm:$0x1] %v11_v0 }
   0x3   :  { %13 = vsyncpa [#allocation4], 0  ;;  %s2613_s23 = smov [#allocation3]   ;;  %s2589_s27 = scalar_lea.hbm %s4418_s3, 4608 }
   0x4   :  { %s25_s24 = sshll.u32 %s2613_s23, 4  ;;  %p2590_p0 = scmp.ne.s32.totalorder %s4418_s3, %s2589_s27  ;;  %s26_s24 = int_to_ptr.vmem [resolvable:$true] %s25_s24 }
   0x5   :  { %p2593_p1 = scmp.lt.u32.totalorder %s2589_s27, %s4418_s3 }
   0x7   :  { %p2595_p2 = pnand %p2593_p1, %p2590_p0 }
   0x9   :  { %2598 = shalt.err (!%p2595_p2)
}
   0xa   :  { %s2599_s5 = scalar_lea.vmem %s26_s24, 4608  ;;  %p2604_p4 = scmp.lt.s32.totalorder %s26_s24, %s26_s24 }
   0xb   :  { %p2600_p3 = scmp.ne.s32.totalorder %s26_s24, %s2599_s5  ;;  %p2605_p5 = scmp.lt.s32.totalorder %s2599_s5, %s2599_s5 }
   0xd   :  { %p2606_p6 = por %p2605_p5, %p2604_p4 }
   0xf   :  { %p2607_p7 = pnand %p2606_p6, %p2600_p3 }
  0x11   :  { %2610 = shalt.err (!%p2607_p7)
}
  0x12   :  { %s2614_s8 = smov 128   ;;  %s2615_s9 = smov 8  }
  0x13   :  { %31 = dma.hbm_to_vmem [thread:$0]  %s4418_s3, 4608, %s26_s24, [#allocation4], %s2614_s8, %s2614_s8, %s2615_s9  }
  0x14   :  { %2611 = dma.done.wait [#allocation4], 4608  }
  0x15   :  { %2612 = vsyncadd [#allocation4], 4294962688  ;;  %v56_v1 = vld [vmem:[%s4416_s1 + $0x8] sm:$0xff]  ;;  %v58_v3 = vld [vmem:[%s4416_s1 + $0x18] sm:$0xff]  ;;  %vm169_vm0 = vcmask 424960   ;;  %vm194_vm1 = vcmask 1043456  }
  0x16   :  { %v60_v2 = vld [vmem:[%s4416_s1 + $0x28] sm:$0xff]  ;;  %v62_v5 = vld [vmem:[%s4416_s1 + $0x38] sm:$0xff]  ;;  %v55_v6 = vld [vmem:[%s4416_s1] sm:$0xff]  ;;  %s2617_s28 = smov 96   ;;  %vm1252_vm6 = vcmask 523264   ;;  %s2619_s7 = smov 48  }
  0x17   :  { %v2168_v4 = vpack.c.bf16 %v60_v2, %v56_v1  ;;  %v59_v7 = vld [vmem:[%s4416_s1 + $0x20] sm:$0xff]  ;;  %v2212_v8 = vpack.c.bf16 %v62_v5, %v58_v3  ;;  %v57_v10 = vld [vmem:[%s4416_s1 + $0x10] sm:$0xff]  ;;  %v64_v12 = vld [vmem:[%s4416_s1 + $0x48] sm:$0xff]  ;;  %vm1807_vm7 = vcmask 326656  }
  0x18   :  { %v2170_v9 = vpack.c.bf16 %v59_v7, %v55_v6  ;;  %v61_v11 = vld [vmem:[%s4416_s1 + $0x30] sm:$0xff]  ;;  %v68_v14 = vld [vmem:[%s4416_s1 + $0x68] sm:$0xff]  ;;  %v66_v15 = vld [vmem:[%s4416_s1 + $0x58] sm:$0xff] }
  0x19   :  { %2169 = vmatprep.subr.bf16.mxu0 %v2168_v4  ;;  %v2214_v13 = vpack.c.bf16 %v61_v11, %v57_v10  ;;  %v70_v16 = vld [vmem:[%s4416_s1 + $0x78] sm:$0xff]  ;;  %2213 = vmatprep.subr.bf16.mxu1 %v2212_v8  ;;  %v2172_v17 = vpack.c.bf16 %v68_v14, %v64_v12  ;;  %v63_v19 = vld [vmem:[%s4416_s1 + $0x40] sm:$0xff]  ;;  %v65_v21 = vld [vmem:[%s4416_s1 + $0x50] sm:$0xff] }
  0x1a   :  { %2171 = vmatpush1.bf16.msra.mxu0 %v2170_v9  ;;  %v2216_v18 = vpack.c.bf16 %v70_v16, %v66_v15  ;;  %v67_v20 = vld [vmem:[%s4416_s1 + $0x60] sm:$0xff]  ;;  %v69_v23 = vld [vmem:[%s4416_s1 + $0x70] sm:$0xff]  ;;  %v72_v24 = vld [vmem:[%s4416_s1 + $0x88] sm:$0xff] }
  0x1b   :  { %2215 = vmatpush1.bf16.msra.mxu1 %v2214_v13  ;;  %v2174_v22 = vpack.c.bf16 %v67_v20, %v63_v19  ;;  %v76_v25 = vld [vmem:[%s4416_s1 + $0xa8] sm:$0xff]  ;;  %2173 = vmatprep.subr.bf16.mxu0 %v2172_v17  ;;  %v2218_v26 = vpack.c.bf16 %v69_v23, %v65_v21  ;;  %v74_v28 = vld [vmem:[%s4416_s1 + $0x98] sm:$0xff]  ;;  %v71_v30 = vld [vmem:[%s4416_s1 + $0x80] sm:$0xff] }
  0x1c   :  { %2217 = vmatprep.subr.bf16.mxu1 %v2216_v18  ;;  %v2176_v27 = vpack.c.bf16 %v76_v25, %v72_v24  ;;  %v78_v29 = vld [vmem:[%s4416_s1 + $0xb8] sm:$0xff]  ;;  %v75_v32 = vld [vmem:[%s4416_s1 + $0xa0] sm:$0xff]  ;;  %v73_v33 = vld [vmem:[%s4416_s1 + $0x90] sm:$0xff] }
  0x1d   :  { %v2220_v31 = vpack.c.bf16 %v78_v29, %v74_v28  ;;  %v77_v34 = vld [vmem:[%s4416_s1 + $0xb0] sm:$0xff]  ;;  %v2178_v35 = vpack.c.bf16 %v75_v32, %v71_v30  ;;  %v80_v36 = vld [vmem:[%s4416_s1 + $0xc8] sm:$0xff]  ;;  %v82_v38 = vld [vmem:[%s4416_s1 + $0xd8] sm:$0xff] }
  0x1e   :  { %2175 = vmatpush1.bf16.msra.mxu0 %v2174_v22  ;;  %v84_v37 = vld [vmem:[%s4416_s1 + $0xe8] sm:$0xff]  ;;  %v2222_v39 = vpack.c.bf16 %v77_v34, %v73_v33  ;;  %v86_v41 = vld [vmem:[%s4416_s1 + $0xf8] sm:$0xff]  ;;  %v79_v42 = vld [vmem:[%s4416_s1 + $0xc0] sm:$0xff] }
  0x1f   :  { %2219 = vmatpush1.bf16.msra.mxu1 %v2218_v26  ;;  %2177 = vmatprep.subr.bf16.mxu0 %v2176_v27  ;;  %v2180_v40 = vpack.c.bf16 %v84_v37, %v80_v36  ;;  %v83_v43 = vld [vmem:[%s4416_s1 + $0xe0] sm:$0xff]  ;;  %v2224_v44 = vpack.c.bf16 %v86_v41, %v82_v38  ;;  %v81_v45 = vld [vmem:[%s4416_s1 + $0xd0] sm:$0xff]  ;;  %v88_v47 = vld [vmem:[%s4416_s1 + $0x108] sm:$0xff] }
  0x20   :  { %2221 = vmatprep.subr.bf16.mxu1 %v2220_v31  ;;  %v85_v46 = vld [vmem:[%s4416_s1 + $0xf0] sm:$0xff]  ;;  %v92_v48 = vld [vmem:[%s4416_s1 + $0x128] sm:$0xff]  ;;  %v90_v49 = vld [vmem:[%s4416_s1 + $0x118] sm:$0xff]  ;;  %v2182_v51 = vpack.c.bf16 %v83_v43, %v79_v42 }
  0x21   :  { %v94_v50 = vld [vmem:[%s4416_s1 + $0x138] sm:$0xff]  ;;  %v2226_v52 = vpack.c.bf16 %v85_v46, %v81_v45  ;;  %v2184_v53 = vpack.c.bf16 %v92_v48, %v88_v47  ;;  %v87_v54 = vld [vmem:[%s4416_s1 + $0x100] sm:$0xff]  ;;  %v89_v56 = vld [vmem:[%s4416_s1 + $0x110] sm:$0xff] }
  0x22   :  { %2179 = vmatpush1.bf16.msra.mxu0 %v2178_v35  ;;  %v91_v55 = vld [vmem:[%s4416_s1 + $0x120] sm:$0xff]  ;;  %v2228_v57 = vpack.c.bf16 %v94_v50, %v90_v49  ;;  %v93_v58 = vld [vmem:[%s4416_s1 + $0x130] sm:$0xff]  ;;  %v96_v59 = vld [vmem:[%s4416_s1 + $0x148] sm:$0xff] }
  0x23   :  { %2223 = vmatpush1.bf16.msra.mxu1 %v2222_v39  ;;  %2181 = vmatprep.subr.bf16.mxu0 %v2180_v40  ;;  %v100_v60 = vld [vmem:[%s4416_s1 + $0x168] sm:$0xff]  ;;  %v98_v61 = vld [vmem:[%s4416_s1 + $0x158] sm:$0xff]  ;;  %v2186_v63 = vpack.c.bf16 %v91_v55, %v87_v54  ;;  %v2230_v0 = vpack.c.bf16 %v93_v58, %v89_v56  ;;  %v95_v2 = vld [vmem:[%s4416_s1 + $0x140] sm:$0xff] }
  0x24   :  { %2225 = vmatprep.subr.bf16.mxu1 %v2224_v44  ;;  %v102_v62 = vld [vmem:[%s4416_s1 + $0x178] sm:$0xff]  ;;  %v2188_v1 = vpack.c.bf16 %v100_v60, %v96_v59  ;;  %v99_v3 = vld [vmem:[%s4416_s1 + $0x160] sm:$0xff]  ;;  %v97_v4 = vld [vmem:[%s4416_s1 + $0x150] sm:$0xff] }
  0x25   :  { %v2232_v5 = vpack.c.bf16 %v102_v62, %v98_v61  ;;  %v101_v6 = vld [vmem:[%s4416_s1 + $0x170] sm:$0xff]  ;;  %v104_v7 = vld [vmem:[%s4416_s1 + $0x188] sm:$0xff]  ;;  %v106_v9 = vld [vmem:[%s4416_s1 + $0x198] sm:$0xff]  ;;  %v2190_v11 = vpack.c.bf16 %v99_v3, %v95_v2 }
  0x26   :  { %2183 = vmatpush1.bf16.msra.mxu0 %v2182_v51  ;;  %v108_v8 = vld [vmem:[%s4416_s1 + $0x1a8] sm:$0xff]  ;;  %v110_v10 = vld [vmem:[%s4416_s1 + $0x1b8] sm:$0xff]  ;;  %v2234_v12 = vpack.c.bf16 %v101_v6, %v97_v4  ;;  %v103_v14 = vld [vmem:[%s4416_s1 + $0x180] sm:$0xff] }
  0x27   :  { %2227 = vmatpush1.bf16.msra.mxu1 %v2226_v52  ;;  %2185 = vmatprep.subr.bf16.mxu0 %v2184_v53  ;;  %v2192_v13 = vpack.c.bf16 %v108_v8, %v104_v7  ;;  %v107_v15 = vld [vmem:[%s4416_s1 + $0x1a0] sm:$0xff]  ;;  %v105_v16 = vld [vmem:[%s4416_s1 + $0x190] sm:$0xff]  ;;  %v2236_v17 = vpack.c.bf16 %v110_v10, %v106_v9  ;;  %v112_v19 = vld [vmem:[%s4416_s1 + $0x1c8] sm:$0xff] }
  0x28   :  { %2229 = vmatprep.subr.bf16.mxu1 %v2228_v57  ;;  %v109_v18 = vld [vmem:[%s4416_s1 + $0x1b0] sm:$0xff]  ;;  %v116_v20 = vld [vmem:[%s4416_s1 + $0x1e8] sm:$0xff]  ;;  %v114_v21 = vld [vmem:[%s4416_s1 + $0x1d8] sm:$0xff]  ;;  %v2194_v23 = vpack.c.bf16 %v107_v15, %v103_v14 }
  0x29   :  { %v118_v22 = vld [vmem:[%s4416_s1 + $0x1f8] sm:$0xff]  ;;  %v2238_v24 = vpack.c.bf16 %v109_v18, %v105_v16  ;;  %v2196_v25 = vpack.c.bf16 %v116_v20, %v112_v19  ;;  %v111_v26 = vld [vmem:[%s4416_s1 + $0x1c0] sm:$0xff]  ;;  %v113_v28 = vld [vmem:[%s4416_s1 + $0x1d0] sm:$0xff] }
  0x2a   :  { %2187 = vmatpush1.bf16.msra.mxu0 %v2186_v63  ;;  %v115_v27 = vld [vmem:[%s4416_s1 + $0x1e0] sm:$0xff]  ;;  %v2240_v29 = vpack.c.bf16 %v118_v22, %v114_v21  ;;  %v117_v30 = vld [vmem:[%s4416_s1 + $0x1f0] sm:$0xff]  ;;  %v120_v31 = vld [vmem:[%s4416_s1 + $0x208] sm:$0xff] }
  0x2b   :  { %2231 = vmatpush1.bf16.msra.mxu1 %v2230_v0  ;;  %2189 = vmatprep.subr.bf16.mxu0 %v2188_v1  ;;  %v124_v32 = vld [vmem:[%s4416_s1 + $0x228] sm:$0xff]  ;;  %v122_v33 = vld [vmem:[%s4416_s1 + $0x218] sm:$0xff]  ;;  %v2198_v35 = vpack.c.bf16 %v115_v27, %v111_v26  ;;  %v119_v36 = vld [vmem:[%s4416_s1 + $0x200] sm:$0xff]  ;;  %v2242_v37 = vpack.c.bf16 %v117_v30, %v113_v28 }
  0x2c   :  { %2233 = vmatprep.subr.bf16.mxu1 %v2232_v5  ;;  %v126_v34 = vld [vmem:[%s4416_s1 + $0x238] sm:$0xff]  ;;  %v2200_v38 = vpack.c.bf16 %v124_v32, %v120_v31  ;;  %v123_v39 = vld [vmem:[%s4416_s1 + $0x220] sm:$0xff]  ;;  %v121_v40 = vld [vmem:[%s4416_s1 + $0x210] sm:$0xff] }
  0x2d   :  { %v125_v41 = vld [vmem:[%s4416_s1 + $0x230] sm:$0xff]  ;;  %v2244_v42 = vpack.c.bf16 %v126_v34, %v122_v33  ;;  %v128_v43 = vld [vmem:[%s4416_s1 + $0x248] sm:$0xff]  ;;  %v130_v46 = vld [vmem:[%s4416_s1 + $0x258] sm:$0xff]  ;;  %v2202_v48 = vpack.c.bf16 %v123_v39, %v119_v36 }
  0x2e   :  { %2191 = vmatpush1.bf16.msra.mxu0 %v2190_v11  ;;  %v132_v44 = vld [vmem:[%s4416_s1 + $0x268] sm:$0xff]  ;;  %v134_v47 = vld [vmem:[%s4416_s1 + $0x278] sm:$0xff]  ;;  %v2246_v49 = vpack.c.bf16 %v125_v41, %v121_v40  ;;  %v127_v51 = vld [vmem:[%s4416_s1 + $0x240] sm:$0xff] }
  0x2f   :  { %2235 = vmatpush1.bf16.msra.mxu1 %v2234_v12  ;;  %2193 = vmatprep.subr.bf16.mxu0 %v2192_v13  ;;  %v40_v45 = vld [vmem:[%s4415_s0 + $0x8] sm:$0xff]  ;;  %v2204_v50 = vpack.c.bf16 %v132_v44, %v128_v43  ;;  %v131_v52 = vld [vmem:[%s4416_s1 + $0x260] sm:$0xff]  ;;  %v129_v53 = vld [vmem:[%s4416_s1 + $0x250] sm:$0xff]  ;;  %v2248_v54 = vpack.c.bf16 %v134_v47, %v130_v46 }
  0x30   :  { %2237 = vmatprep.subr.bf16.mxu1 %v2236_v17  ;;  %1839 = vmatprep.mubr.msk.f32.mxu0 %vm169_vm0, %v40_v45  ;;  %v133_v55 = vld [vmem:[%s4416_s1 + $0x270] sm:$0xff]  ;;  %v136_v56 = vld [vmem:[%s4416_s1 + $0x288] sm:$0xff]  ;;  %v138_v58 = vld [vmem:[%s4416_s1 + $0x298] sm:$0xff]  ;;  %v2206_v60 = vpack.c.bf16 %v131_v52, %v127_v51 }
  0x31   :  { %1849 = vmatprep.mubr.msk.f32.mxu1 %vm169_vm0, %v40_v45  ;;  %v140_v57 = vld [vmem:[%s4416_s1 + $0x2a8] sm:$0xff]  ;;  %v142_v59 = vld [vmem:[%s4416_s1 + $0x2b8] sm:$0xff]  ;;  %v2250_v61 = vpack.c.bf16 %v133_v55, %v129_v53  ;;  %v135_v63 = vld [vmem:[%s4416_s1 + $0x280] sm:$0xff] }
  0x32   :  { %2195 = vmatpush1.bf16.msra.mxu0 %v2194_v23  ;;  %v2208_v62 = vpack.c.bf16 %v140_v57, %v136_v56  ;;  %v139_v0 = vld [vmem:[%s4416_s1 + $0x2a0] sm:$0xff]  ;;  %v2252_v1 = vpack.c.bf16 %v142_v59, %v138_v58  ;;  %v137_v2 = vld [vmem:[%s4416_s1 + $0x290] sm:$0xff]  ;;  %v144_v6 = vld [vmem:[%s4416_s1 + $0x2c8] sm:$0xf] }
  0x33   :  { %2239 = vmatpush1.bf16.msra.mxu1 %v2238_v24  ;;  %2197 = vmatprep.subr.bf16.mxu0 %v2196_v25  ;;  %v141_v3 = vld [vmem:[%s4416_s1 + $0x2b0] sm:$0xff]  ;;  %v2210_v4 = vpack.c.bf16 %v139_v0, %v135_v63  ;;  %v146_v7 = vld [vmem:[%s4416_s1 + $0x2d8] sm:$0xf]  ;;  %v143_v8 = vld [vmem:[%s4416_s1 + $0x2c0] sm:$0xf]  ;;  %v4422_v25 = vlaneseq }
  0x34   :  { %2241 = vmatprep.subr.bf16.mxu1 %v2240_v29  ;;  %v2254_v5 = vpack.c.bf16 %v141_v3, %v137_v2  ;;  %v145_v9 = vld [vmem:[%s4416_s1 + $0x2d0] sm:$0xf]  ;;  %v39_v10 = vld [vmem:[%s4415_s0] sm:$0xff]  ;;  %v42_v11 = vld [vmem:[%s4415_s0 + $0x18] sm:$0xff] }
  0x35   :  { %v41_v12 = vld [vmem:[%s4415_s0 + $0x10] sm:$0xff]  ;;  %v44_v13 = vld [vmem:[%s4415_s0 + $0x28] sm:$0xff]  ;;  %v43_v14 = vld [vmem:[%s4415_s0 + $0x20] sm:$0xff]  ;;  %v3012_v26 = vshrl.u32 %v4422_v25, 7 }
  0x36   :  { %2199 = vmatpush1.bf16.msra.mxu0 %v2198_v35  ;;  %v46_v15 = vld [vmem:[%s4415_s0 + $0x38] sm:$0xff]  ;;  %v45_v16 = vld [vmem:[%s4415_s0 + $0x30] sm:$0xff]  ;;  %v48_v17 = vld [vmem:[%s4415_s0 + $0x48] sm:$0xff] }
  0x37   :  { %2243 = vmatpush1.bf16.msra.mxu1 %v2242_v37  ;;  %2201 = vmatprep.subr.bf16.mxu0 %v2200_v38  ;;  %v47_v18 = vld [vmem:[%s4415_s0 + $0x40] sm:$0xff]  ;;  %v50_v19 = vld [vmem:[%s4415_s0 + $0x58] sm:$0xff]  ;;  %v49_v20 = vld [vmem:[%s4415_s0 + $0x50] sm:$0xff]  ;;  %v151_v27 = vsub.s32 0, %v3012_v26  ;;  %v159_v29 = vsub.s32 2, %v3012_v26  ;;  %v155_v30 = vsub.s32 1, %v3012_v26 }
  0x38   :  { %2245 = vmatprep.subr.bf16.mxu1 %v2244_v42  ;;  %v52_v21 = vld [vmem:[%s4415_s0 + $0x68] sm:$0xff]  ;;  %v51_v22 = vld [vmem:[%s4415_s0 + $0x60] sm:$0xff]  ;;  %v54_v23 = vld [vmem:[%s4415_s0 + $0x78] sm:$0xff]  ;;  %v163_v31 = vsub.s32 3, %v3012_v26  ;;  %vm499_vm2 = vcmp.lt.s32.totalorder %v3012_v26, 7  ;;  %vm596_vm3 = vcmp.lt.s32.totalorder %v3012_v26, 6 }
  0x39   :  { %v53_v24 = vld [vmem:[%s4415_s0 + $0x70] sm:$0xff]  ;;  %v147_v28 = vld [vmem:[%s4417_s2] sm:$0xf]  ;;  %s2616_s0 = smov 112  }
  0x3a   :  { %2203 = vmatpush1.bf16.msra.mxu0 %v2202_v48  ;;  %v3021_v32 = vrot.slane %v147_v28, %v151_v27  ;;  %v3023_v33 = vrot.slane %v147_v28, %v159_v29  ;;  %v3025_v34 = vrot.slane %v147_v28, %v155_v30  ;;  %v3027_v35 = vrot.slane %v147_v28, %v163_v31 }
  0x3b   :  { %2247 = vmatpush1.bf16.msra.mxu1 %v2246_v49  ;;  %2205 = vmatprep.subr.bf16.mxu0 %v2204_v50 }
  0x3c   :  { %2249 = vmatprep.subr.bf16.mxu1 %v2248_v54 }
  0x3e   :  { %2207 = vmatpush1.bf16.msra.mxu0 %v2206_v60 }
  0x3f   :  { %2251 = vmatpush1.bf16.msra.mxu1 %v2250_v61  ;;  %2209 = vmatprep.subr.bf16.mxu0 %v2208_v62 }
  0x40   :  { %2253 = vmatprep.subr.bf16.mxu1 %v2252_v1 }
  0x42   :  { %2211 = vmatpush1.bf16.msra.mxu0 %v2210_v4 }
  0x43   :  { %2255 = vmatpush1.bf16.msra.mxu1 %v2254_v5  ;;  %1837 = vmatprep.subr.msk.mxu0 %vm194_vm1, %v144_v6 }
  0x44   :  { %1847 = vmatprep.subr.msk.mxu1 %vm194_vm1, %v146_v7 }
  0x46   :  { %1838 = vmatpush1.msk.msra.mxu0 %vm194_vm1, %v143_v8 }
  0x47   :  { %1848 = vmatpush1.msk.msra.mxu1 %vm194_vm1, %v145_v9  ;;  %272 = vmatmul.mubr.f32.vlgmr.msra.gmra.mrb[0].mxu0 %v39_v10 }
  0x48   :  { %385 = vmatmul.mubr.f32.vlgmr.msra.gmra.mrb[0].mxu1 %v39_v10  ;;  %1840 = vmatprep.mubr.msk.f32.mxu0 %vm169_vm0, %v42_v11 }
  0x49   :  { %1850 = vmatprep.mubr.msk.f32.mxu1 %vm169_vm0, %v42_v11 }
  0x4b   :  { %278 = vmatmul.mubr.f32.gmra.mrb[2].mxu0 %v41_v12 }
  0x4c   :  { %391 = vmatmul.mubr.f32.gmra.mrb[2].mxu1 %v41_v12  ;;  %1841 = vmatprep.mubr.msk.f32.mxu0 %vm169_vm0, %v44_v13 }
  0x4d   :  { %1851 = vmatprep.mubr.msk.f32.mxu1 %vm169_vm0, %v44_v13 }
  0x4f   :  { %284 = vmatmul.mubr.f32.gmra.mrb[4].mxu0 %v43_v14 }
  0x50   :  { %397 = vmatmul.mubr.f32.gmra.mrb[4].mxu1 %v43_v14  ;;  %1842 = vmatprep.mubr.msk.f32.mxu0 %vm169_vm0, %v46_v15 }
  0x51   :  { %1852 = vmatprep.mubr.msk.f32.mxu1 %vm169_vm0, %v46_v15 }
  0x53   :  { %290 = vmatmul.mubr.f32.gmra.mrb[6].mxu0 %v45_v16 }
  0x54   :  { %403 = vmatmul.mubr.f32.gmra.mrb[6].mxu1 %v45_v16  ;;  %1843 = vmatprep.mubr.msk.f32.mxu0 %vm169_vm0, %v48_v17 }
  0x55   :  { %1853 = vmatprep.mubr.msk.f32.mxu1 %vm169_vm0, %v48_v17 }
  0x57   :  { %296 = vmatmul.mubr.f32.gmra.mrb[8].mxu0 %v47_v18 }
  0x58   :  { %409 = vmatmul.mubr.f32.gmra.mrb[8].mxu1 %v47_v18  ;;  %1844 = vmatprep.mubr.msk.f32.mxu0 %vm169_vm0, %v50_v19 }
  0x59   :  { %1854 = vmatprep.mubr.msk.f32.mxu1 %vm169_vm0, %v50_v19 }
  0x5b   :  { %302 = vmatmul.mubr.f32.gmra.mrb[10].mxu0 %v49_v20 }
  0x5c   :  { %415 = vmatmul.mubr.f32.gmra.mrb[10].mxu1 %v49_v20  ;;  %1845 = vmatprep.mubr.msk.f32.mxu0 %vm169_vm0, %v52_v21 }
  0x5d   :  { %1855 = vmatprep.mubr.msk.f32.mxu1 %vm169_vm0, %v52_v21 }
  0x5f   :  { %308 = vmatmul.mubr.f32.gmra.mrb[12].mxu0 %v51_v22 }
  0x60   :  { %421 = vmatmul.mubr.f32.gmra.mrb[12].mxu1 %v51_v22  ;;  %1846 = vmatprep.mubr.msk.f32.mxu0 %vm169_vm0, %v54_v23 }
  0x61   :  { %1856 = vmatprep.mubr.msk.f32.mxu1 %vm169_vm0, %v54_v23 }
  0x63   :  { %314 = vmatmul.mubr.f32.gmra.mrb[14].mxu0 %v53_v24 }
  0x64   :  { %427 = vmatmul.mubr.f32.gmra.mrb[14].mxu1 %v53_v24 }
 0x11a   :  { %v273_v36 = vpop.f32.mrb[0].mxu0 }
 0x11b   :  { %v274_v37 = vadd.f32 %v273_v36, %v3021_v32  ;;  %v386_v38 = vpop.f32.mrb[0].mxu1  ;;  %v275_v39 = vpop.f32.mrb[1].mxu0 }
 0x11c   :  { %v3031_v40 = vadd.f32 %v386_v38, %v3023_v33  ;;  %v3034_v41 = vadd.f32 %v275_v39, %v3025_v34  ;;  %v388_v42 = vpop.f32.mrb[1].mxu1 }
 0x11d   :  { %v433_v43 = vmax.f32 %v274_v37, 0.0  ;;  %v389_v44 = vadd.f32 %v388_v42, %v3027_v35 }
 0x11e   :  { %v435_v45 = vmax.f32 %v3031_v40, 0.0  ;;  %v434_v46 = vmax.f32 %v3034_v41, 0.0  ;;  %v279_v47 = vpop.f32.mrb[2].mxu0 }
 0x11f   :  { %v436_v48 = vmax.f32 %v389_v44, 0.0  ;;  %v280_v49 = vadd.f32 %v279_v47, %v3021_v32  ;;  %v392_v50 = vpop.f32.mrb[2].mxu1  ;;  %v281_v51 = vpop.f32.mrb[3].mxu0  ;;  %v3042_v55 = vrot.slane %v433_v43, 1 }
 0x120   :  { %v393_v52 = vadd.f32 %v392_v50, %v3023_v33  ;;  %v282_v53 = vadd.f32 %v281_v51, %v3025_v34  ;;  %v394_v54 = vpop.f32.mrb[3].mxu1  ;;  %v3048_v58 = vrot.slane %v435_v45, 1  ;;  %v3052_v59 = vrot.slane %v434_v46, 1 }
 0x121   :  { %v437_v56 = vmax.f32 %v280_v49, 0.0  ;;  %v395_v57 = vadd.f32 %v394_v54, %v3027_v35  ;;  %v3054_v63 = vrot.slane %v436_v48, 1 }
 0x122   :  { %v439_v60 = vmax.f32 %v393_v52, 0.0  ;;  %v438_v61 = vmax.f32 %v282_v53, 0.0  ;;  %v285_v62 = vpop.f32.mrb[4].mxu0 }
 0x123   :  { %v469_v0 = vrot.slane %v437_v56, 1  ;;  %v440_v1 = vmax.f32 %v395_v57, 0.0  ;;  %v286_v2 = vadd.f32 %v285_v62, %v3021_v32  ;;  %v398_v3 = vpop.f32.mrb[4].mxu1  ;;  %v287_v4 = vpop.f32.mrb[5].mxu0 }
 0x124   :  { %v3057_v5 = vrot.slane %v439_v60, 1  ;;  %v470_v6 = vrot.slane %v438_v61, 1  ;;  %v399_v7 = vadd.f32 %v398_v3, %v3023_v33  ;;  %v3061_v8 = vadd.f32 %v287_v4, %v3025_v34  ;;  %v400_v9 = vpop.f32.mrb[5].mxu1 }
 0x125   :  { %v524_v10 = vsel %vm499_vm2, %v3042_v55, %v469_v0  ;;  %v472_v11 = vrot.slane %v440_v1, 1  ;;  %v441_v12 = vmax.f32 %v286_v2, 0.0  ;;  %v3067_v13 = vadd.f32 %v400_v9, %v3027_v35 }
 0x126   :  { %v3069_v14 = vmax.f32 %v433_v43, %v524_v10  ;;  %v443_v15 = vmax.f32 %v399_v7, 0.0  ;;  %v442_v16 = vmax.f32 %v3061_v8, 0.0  ;;  %v291_v17 = vpop.f32.mrb[6].mxu0  ;;  %v3075_v18 = vsel %vm499_vm2, %v3052_v59, %v470_v6 }
 0x127   :  { %v527_v19 = vsel %vm499_vm2, %v3054_v63, %v472_v11  ;;  %v473_v20 = vrot.slane %v441_v12, 1  ;;  %v444_v21 = vmax.f32 %v3067_v13, 0.0  ;;  %v3082_v22 = vadd.f32 %v291_v17, %v3021_v32  ;;  %v404_v23 = vpop.f32.mrb[6].mxu1  ;;  %v293_v24 = vpop.f32.mrb[7].mxu0 }
 0x128   :  { %v3084_v27 = vmax.f32 %v436_v48, %v527_v19  ;;  %v475_v28 = vrot.slane %v443_v15, 1  ;;  %v474_v29 = vrot.slane %v442_v16, 1  ;;  %v405_v30 = vadd.f32 %v404_v23, %v3023_v33  ;;  %v406_v31 = vpop.f32.mrb[7].mxu1 }
 0x129   :  { %v520_v36 = vsel %vm499_vm2, %v469_v0, %v473_v20  ;;  %v476_v37 = vrot.slane %v444_v21, 1  ;;  %v445_v38 = vmax.f32 %v3082_v22, 0.0  ;;  %v3093_v39 = vadd.f32 %v293_v24, %v3025_v34 }
 0x12a   :  { %v3095_v42 = vmax.f32 %v437_v56, %v520_v36  ;;  %v522_v43 = vsel %vm499_vm2, %v3057_v5, %v475_v28  ;;  %v521_v44 = vsel %vm499_vm2, %v470_v6, %v474_v29  ;;  %v447_v47 = vmax.f32 %v405_v30, 0.0  ;;  %v297_v48 = vpop.f32.mrb[8].mxu0 }
 0x12b   :  { %v3102_v49 = vmax.f32 %v439_v60, %v522_v43  ;;  %v3104_v50 = vmax.f32 %v438_v61, %v521_v44  ;;  %v523_v51 = vsel %vm499_vm2, %v472_v11, %v476_v37  ;;  %v477_v52 = vrot.slane %v445_v38, 1  ;;  %v410_v53 = vpop.f32.mrb[8].mxu1  ;;  %v299_v54 = vpop.f32.mrb[9].mxu0 }
 0x12c   :  { %v568_v56 = vrot.slane %v3095_v42, 2  ;;  %v3109_v57 = vmax.f32 %v440_v1, %v523_v51  ;;  %v479_v62 = vrot.slane %v447_v47, 1  ;;  %v446_v0 = vmax.f32 %v3093_v39, 0.0  ;;  %v412_v2 = vpop.f32.mrb[9].mxu1 }
 0x12d   :  { %v516_v60 = vsel %vm499_vm2, %v473_v20, %v477_v52  ;;  %v407_v61 = vadd.f32 %v406_v31, %v3027_v35  ;;  %v3116_v3 = vadd.f32 %v297_v48, %v3021_v32  ;;  %v3119_v4 = vadd.f32 %v410_v53, %v3023_v33 }
 0x12e   :  { %v3122_v7 = vmax.f32 %v441_v12, %v516_v60  ;;  %v518_v1 = vsel %vm499_vm2, %v475_v28, %v479_v62  ;;  %v478_v8 = vrot.slane %v446_v0, 1  ;;  %v303_v9 = vpop.f32.mrb[10].mxu0  ;;  %v300_v24 = vadd.f32 %v299_v54, %v3025_v34 }
 0x12f   :  { %v3126_v10 = vmax.f32 %v443_v15, %v518_v1  ;;  %v448_v11 = vmax.f32 %v407_v61, 0.0  ;;  %v449_v17 = vmax.f32 %v3116_v3, 0.0  ;;  %v451_v19 = vmax.f32 %v3119_v4, 0.0  ;;  %v416_v20 = vpop.f32.mrb[10].mxu1  ;;  %v305_v22 = vpop.f32.mrb[11].mxu0 }
 0x130   :  { %v517_v12 = vsel %vm499_vm2, %v474_v29, %v478_v8  ;;  %v3135_v28 = vadd.f32 %v412_v2, %v3027_v35  ;;  %v418_v30 = vpop.f32.mrb[11].mxu1  ;;  %v450_v43 = vmax.f32 %v300_v24, 0.0  ;;  %v3141_v48 = vadd.f32 %v303_v9, %v3021_v32 }
 0x131   :  { %v3137_v15 = vmax.f32 %v442_v16, %v517_v12  ;;  %v480_v31 = vrot.slane %v448_v11, 1  ;;  %v481_v36 = vrot.slane %v449_v17, 1  ;;  %v483_v39 = vrot.slane %v451_v19, 1 }
 0x132   :  { %v452_v44 = vmax.f32 %v3135_v28, 0.0  ;;  %v3144_v51 = vadd.f32 %v416_v20, %v3023_v33  ;;  %v309_v29 = vpop.f32.mrb[12].mxu0  ;;  %v3153_v2 = vadd.f32 %v305_v22, %v3025_v34  ;;  %v419_v13 = vadd.f32 %v418_v30, %v3027_v35 }
 0x133   :  { %v519_v53 = vsel %vm499_vm2, %v476_v37, %v480_v31  ;;  %v512_v16 = vsel %vm499_vm2, %v477_v52, %v481_v36  ;;  %v514_v54 = vsel %vm499_vm2, %v479_v62, %v483_v39  ;;  %v422_v60 = vpop.f32.mrb[12].mxu1  ;;  %v311_v61 = vpop.f32.mrb[13].mxu0  ;;  %v482_v37 = vrot.slane %v450_v43, 1 }
 0x134   :  { %v3157_v3 = vmax.f32 %v444_v21, %v519_v53  ;;  %v3159_v4 = vmax.f32 %v445_v38, %v512_v16  ;;  %v3161_v1 = vmax.f32 %v447_v47, %v514_v54  ;;  %v424_v9 = vpop.f32.mrb[13].mxu1  ;;  %v484_v52 = vrot.slane %v452_v44, 1 }
 0x135   :  { %v453_v62 = vmax.f32 %v3141_v48, 0.0  ;;  %v455_v20 = vmax.f32 %v3144_v51, 0.0  ;;  %v454_v22 = vmax.f32 %v3153_v2, 0.0  ;;  %v513_v38 = vsel %vm499_vm2, %v478_v8, %v482_v37 }
 0x136   :  { %v315_v47 = vpop.f32.mrb[14].mxu0  ;;  %v3173_v24 = vmax.f32 %v446_v0, %v513_v38  ;;  %v515_v53 = vsel %vm499_vm2, %v480_v31, %v484_v52  ;;  %v3181_v21 = vadd.f32 %v309_v29, %v3021_v32  ;;  %v456_v0 = vmax.f32 %v419_v13, 0.0 }
 0x137   :  { %v485_v48 = vrot.slane %v453_v62, 1  ;;  %v487_v16 = vrot.slane %v455_v20, 1  ;;  %v428_v51 = vpop.f32.mrb[14].mxu1  ;;  %v317_v54 = vpop.f32.mrb[15].mxu0  ;;  %v3177_v2 = vmax.f32 %v448_v11, %v515_v53  ;;  %v486_v25 = vrot.slane %v454_v22, 1 }
 0x138   :  { %v430_v8 = vpop.f32.mrb[15].mxu1  ;;  %v3190_v11 = vadd.f32 %v422_v60, %v3023_v33  ;;  %v3206_v53 = vadd.f32 %v311_v61, %v3025_v34  ;;  %v526_v61 = vsel %vm499_vm2, %v3048_v58, %v3057_v5  ;;  %v318_v28 = vadd.f32 %v317_v54, %v3025_v34 }
 0x139   :  { %v508_v31 = vsel %vm499_vm2, %v481_v36, %v485_v48  ;;  %v510_v38 = vsel %vm499_vm2, %v483_v39, %v487_v16  ;;  %v509_v12 = vsel %vm499_vm2, %v482_v37, %v486_v25  ;;  %v457_v36 = vmax.f32 %v3181_v21, 0.0 }
 0x13a   :  { %v3193_v30 = vmax.f32 %v449_v17, %v508_v31  ;;  %v3195_v29 = vmax.f32 %v451_v19, %v510_v38  ;;  %v3199_v23 = vmax.f32 %v450_v43, %v509_v12  ;;  %v459_v6 = vmax.f32 %v3190_v11, 0.0 }
 0x13b   :  { %v3209_v17 = vadd.f32 %v424_v9, %v3027_v35  ;;  %v488_v37 = vrot.slane %v456_v0, 1  ;;  %v489_v43 = vrot.slane %v457_v36, 1  ;;  %v4425_v13 = vmax.f32 %v3206_v53, 0.0 }
 0x13c   :  { %v491_v12 = vrot.slane %v459_v6, 1  ;;  %v3225_v9 = vmax.f32 %v434_v46, %v3075_v18  ;;  %v3235_v19 = vmax.f32 %v435_v45, %v526_v61  ;;  %v569_v45 = vrot.slane %v3104_v50, 2 }
 0x13d   :  { %v4424_v31 = vmax.f32 %v3209_v17, 0.0  ;;  %v511_v38 = vsel %vm499_vm2, %v484_v52, %v488_v37  ;;  %v504_v39 = vsel %vm499_vm2, %v485_v48, %v489_v43  ;;  %v490_v18 = vrot.slane %v4425_v13, 1 }
 0x13e   :  { %v506_v60 = vsel %vm499_vm2, %v487_v16, %v491_v12  ;;  %v3239_v5 = vmax.f32 %v452_v44, %v511_v38  ;;  %v3241_v41 = vmax.f32 %v453_v62, %v504_v39  ;;  %v4423_v48 = vrot.slane %v3225_v9, 2 }
 0x13f   :  { %v3243_v46 = vmax.f32 %v455_v20, %v506_v60  ;;  %v492_v52 = vrot.slane %v4424_v31, 1  ;;  %v566_v40 = vrot.slane %v3235_v19, 2  ;;  %v505_v20 = vsel %vm499_vm2, %v486_v25, %v490_v18 }
 0x140   :  { %v3257_v16 = vmax.f32 %v454_v22, %v505_v20  ;;  %v570_v60 = vrot.slane %v3102_v49, 2  ;;  %v622_v61 = vsel %vm596_vm3, %v4423_v48, %v569_v45  ;;  %v316_v62 = vadd.f32 %v315_v47, %v3021_v32 }
 0x141   :  { %v507_v39 = vsel %vm499_vm2, %v488_v37, %v492_v52  ;;  %v3269_v44 = vmax.f32 %v3225_v9, %v622_v61  ;;  %v564_v25 = vrot.slane %v3069_v14, 2  ;;  %v429_v20 = vadd.f32 %v428_v51, %v3023_v33 }
 0x142   :  { %v3266_v38 = vmax.f32 %v456_v0, %v507_v39  ;;  %v623_v37 = vsel %vm596_vm3, %v566_v40, %v570_v60  ;;  %v461_v39 = vmax.f32 %v316_v62, 0.0  ;;  %v431_v61 = vadd.f32 %v430_v8, %v3027_v35 }
 0x143   :  { %v3280_v0 = vmax.f32 %v3235_v19, %v623_v37  ;;  %v463_v32 = vmax.f32 %v429_v20, 0.0  ;;  %v462_v47 = vmax.f32 %v318_v28, 0.0  ;;  %v567_v31 = vrot.slane %v3084_v27, 2 }
 0x144   :  { %v573_v22 = vrot.slane %v3137_v15, 2  ;;  %v493_v33 = vrot.slane %v461_v39, 1  ;;  %v464_v51 = vmax.f32 %v431_v61, 0.0  ;;  %v574_v34 = vrot.slane %v3126_v10, 2 }
 0x145   :  { %v2408_v13 = vpack.i.bf16 %v3280_v0, %v3269_v44  ;;  %v495_v54 = vrot.slane %v463_v32, 1  ;;  %v494_v48 = vrot.slane %v462_v47, 1  ;;  %v621_v35 = vsel %vm596_vm3, %v564_v25, %v568_v56 }
 0x146   :  { %v618_v19 = vsel %vm596_vm3, %v569_v45, %v573_v22  ;;  %v500_v8 = vsel %vm499_vm2, %v489_v43, %v493_v33  ;;  %v528_v28 = vsel %vm499_vm2, %v493_v33, %v3042_v55  ;;  %v496_v62 = vrot.slane %v464_v51, 1 }
 0x147   :  { %2409 = vrot.lane.b32.xlu0 %v2408_v13, %s2616_s0  ;;  %v619_v37 = vsel %vm596_vm3, %v570_v60, %v574_v34  ;;  %v3304_v45 = vmax.f32 %v457_v36, %v500_v8  ;;  %v3306_v20 = vmax.f32 %v461_v39, %v528_v28  ;;  %v502_v13 = vsel %vm499_vm2, %v491_v12, %v495_v54 }
 0x148   :  { %v530_v43 = vsel %vm499_vm2, %v495_v54, %v3048_v58  ;;  %v3315_v55 = vmax.f32 %v459_v6, %v502_v13  ;;  %v501_v21 = vsel %vm499_vm2, %v490_v18, %v494_v48  ;;  %v529_v36 = vsel %vm499_vm2, %v494_v48, %v3052_v59 }
 0x149   :  { %v3317_v61 = vmax.f32 %v463_v32, %v530_v43  ;;  %v588_v60 = vrot.slane %v3304_v45, 2  ;;  %v592_v12 = vrot.slane %v3306_v20, 2  ;;  %v4429_v39 = vmax.f32 %v3206_v53, 0.0 }
 0x14a   :  { %v3330_v11 = vmax.f32 %v462_v47, %v529_v36  ;;  %v590_v6 = vrot.slane %v3315_v55, 2  ;;  %v503_v18 = vsel %vm499_vm2, %v492_v52, %v496_v62  ;;  %v531_v59 = vsel %vm499_vm2, %v496_v62, %v3054_v63 }
 0x14b   :  { %v3328_v58 = vmax.f32 %v4429_v39, %v501_v21  ;;  %v594_v32 = vrot.slane %v3317_v61, 2  ;;  %v625_v53 = vsel %vm596_vm3, %v592_v12, %v564_v25  ;;  %v4430_v33 = vmax.f32 %v3209_v17, 0.0 }
 0x14c   :  { %v593_v47 = vrot.slane %v3330_v11, 2  ;;  %v3350_v8 = vmax.f32 %v3306_v20, %v625_v53  ;;  %v3356_v52 = vmax.f32 %v464_v51, %v531_v59  ;;  %v3359_v25 = vmax.f32 %v3104_v50, %v618_v19 }
 0x14d   :  { %v589_v48 = vrot.slane %v3328_v58, 2  ;;  %v3347_v54 = vmax.f32 %v4430_v33, %v503_v18  ;;  %v627_v63 = vsel %vm596_vm3, %v594_v32, %v566_v40  ;;  %v4431_v17 = vrot.slane %v3225_v9, 2 }
 0x14e   :  { %v3362_v28 = vmax.f32 %v3317_v61, %v627_v63  ;;  %v3372_v43 = vmax.f32 %v3102_v49, %v619_v37  ;;  %v595_v50 = vrot.slane %v3356_v52, 2  ;;  %v4432_v51 = vrot.slane %v3109_v57, 2 }
 0x14f   :  { %v626_v62 = vsel %vm596_vm3, %v593_v47, %v4431_v17  ;;  %v591_v13 = vrot.slane %v3347_v54, 2  ;;  %v3383_v19 = vmax.f32 %v3069_v14, %v621_v35  ;;  %v4433_v49 = vrot.slane %v3122_v7, 2 }
 0x150   :  { %v3375_v40 = vmax.f32 %v3330_v11, %v626_v62  ;;  %v624_v9 = vsel %vm596_vm3, %v567_v31, %v4432_v51  ;;  %v2418_v21 = vpack.i.bf16 %v3372_v43, %v3359_v25  ;;  %v4434_v39 = vrot.slane %v3157_v3, 2 }
 0x151   :  { %v3388_v36 = vmax.f32 %v3084_v27, %v624_v9  ;;  %v617_v37 = vsel %vm596_vm3, %v568_v56, %v4433_v49  ;;  %v4435_v18 = vmov %v4432_v51  ;;  %v628_v35 = vsel %vm596_vm3, %v595_v50, %v567_v31 }
 0x152   :  { %v620_v14 = vsel %vm596_vm3, %v4435_v18, %v4434_v39  ;;  %v3405_v27 = vmax.f32 %v3095_v42, %v617_v37  ;;  %v4436_v53 = vrot.slane %v3173_v24, 2  ;;  %v3415_v33 = vmax.f32 %v3356_v52, %v628_v35  ;;  %2419 = vrot.lane.b32.xlu1 %v2418_v21, %s2616_s0 }
 0x153   :  { %v3408_v59 = vmax.f32 %v3109_v57, %v620_v14  ;;  %v2413_v63 = vpack.i.bf16 %v3383_v19, %v3388_v36  ;;  %v4437_v31 = vrot.slane %v3161_v1, 2  ;;  %v4438_v52 = vrot.slane %v3159_v4, 2 }
 0x154   :  { %v614_v56 = vsel %vm596_vm3, %v573_v22, %v4436_v53  ;;  %v4439_v62 = vmov %v4433_v49  ;;  %v4440_v9 = vrot.slane %v3177_v2, 2  ;;  %v4442_v49 = vrot.slane %v3199_v23, 2 }
 0x155   :  { %v615_v42 = vsel %vm596_vm3, %v574_v34, %v4437_v31  ;;  %v3425_v57 = vmax.f32 %v3137_v15, %v614_v56  ;;  %v2423_v17 = vpack.i.bf16 %v3405_v27, %v3408_v59  ;;  %v613_v51 = vsel %vm596_vm3, %v4439_v62, %v4438_v52  ;;  %2414 = vrot.lane.b32.xlu0 %v2413_v63, %s2616_s0 }
 0x156   :  { %v3430_v22 = vmax.f32 %v3126_v10, %v615_v42  ;;  %v4441_v34 = vmov %v4434_v39  ;;  %v3446_v21 = vmax.f32 %v3122_v7, %v613_v51  ;;  %v4443_v37 = vmov %v4436_v53 }
 0x157   :  { %v616_v15 = vsel %vm596_vm3, %v4441_v34, %v4440_v9  ;;  %v610_v39 = vsel %vm596_vm3, %v4443_v37, %v4442_v49  ;;  %v4444_v18 = vrot.slane %v3195_v29, 2  ;;  %v4445_v14 = vmov %v4437_v31  ;;  %2424 = vrot.lane.b32.xlu1 %v2423_v17, %s2616_s0 }
 0x158   :  { %v3449_v10 = vmax.f32 %v3157_v3, %v616_v15  ;;  %v2428_v7 = vpack.i.bf16 %v3430_v22, %v3425_v57  ;;  %v3466_v3 = vmax.f32 %v3173_v24, %v610_v39  ;;  %v4446_v56 = vrot.slane %v3193_v30, 2 }
 0x159   :  { %v611_v35 = vsel %vm596_vm3, %v4445_v14, %v4444_v18  ;;  %v4447_v63 = vmov %v4438_v52  ;;  %v4448_v52 = vrot.slane %v3239_v5, 2  ;;  %v4449_v24 = vmov %v4440_v9 }
 0x15a   :  { %v3469_v53 = vmax.f32 %v3161_v1, %v611_v35  ;;  %v609_v31 = vsel %vm596_vm3, %v4447_v63, %v4446_v56  ;;  %v2433_v42 = vpack.i.bf16 %v3446_v21, %v3449_v10  ;;  %v4450_v51 = vrot.slane %v3257_v16, 2  ;;  %2429 = vrot.lane.b32.xlu0 %v2428_v7, %s2616_s0 }
 0x15b   :  { %v612_v1 = vsel %vm596_vm3, %v4449_v24, %v4448_v52  ;;  %v3487_v62 = vmax.f32 %v3159_v4, %v609_v31  ;;  %v4451_v9 = vmov %v4442_v49  ;;  %v4452_v49 = vrot.slane %v3243_v46, 2 }
 0x15c   :  { %v606_v17 = vsel %vm596_vm3, %v4451_v9, %v4450_v51  ;;  %v2438_v34 = vpack.i.bf16 %v3469_v53, %v3466_v3  ;;  %v3498_v15 = vmax.f32 %v3177_v2, %v612_v1  ;;  %v4453_v37 = vmov %v4444_v18  ;;  %2434 = vrot.lane.b32.xlu1 %v2433_v42, %s2616_s0 }
 0x15d   :  { %v607_v4 = vsel %vm596_vm3, %v4453_v37, %v4452_v49  ;;  %v3507_v39 = vmax.f32 %v3199_v23, %v606_v17  ;;  %v4454_v14 = vrot.slane %v3241_v41, 2  ;;  %v4455_v2 = vmov %v4446_v56 }
 0x15e   :  { %v3511_v18 = vmax.f32 %v3195_v29, %v607_v4  ;;  %v4456_v56 = vrot.slane %v3266_v38, 2  ;;  %v4457_v63 = vmov %v4448_v52  ;;  %v4458_v7 = vmov %v4450_v51  ;;  %2439 = vrot.lane.b32.xlu0 %v2438_v34, %s2616_s0  ;;  %v922_v34 = vld [vmem:[%s4419_s4 + $0x8] sm:$0xff] }
 0x15f   :  { %v605_v35 = vsel %vm596_vm3, %v4455_v2, %v4454_v14  ;;  %v602_v29 = vsel %vm596_vm3, %v4458_v7, %v589_v48  ;;  %v4459_v24 = vmov %v4452_v49  ;;  %v2443_v17 = vpack.i.bf16 %v3487_v62, %v3498_v15  ;;  %v940_v2 = vld [vmem:[%s4419_s4 + $0x98] sm:$0xff]  ;;  %v941_v7 = vld [vmem:[%s4419_s4 + $0xa0] sm:$0xff] }
 0x160   :  { %v608_v23 = vsel %vm596_vm3, %v4457_v63, %v4456_v56  ;;  %v3532_v31 = vmax.f32 %v3193_v30, %v605_v35  ;;  %v603_v1 = vsel %vm596_vm3, %v4459_v24, %v590_v6  ;;  %v3545_v51 = vmax.f32 %v3257_v16, %v602_v29  ;;  %v923_v63 = vld [vmem:[%s4419_s4 + $0x10] sm:$0xff]  ;;  %v942_v29 = vld [vmem:[%s4419_s4 + $0xa8] sm:$0xff] }
 0x161   :  { %v3535_v52 = vmax.f32 %v3239_v5, %v608_v23  ;;  %v3548_v9 = vmax.f32 %v3243_v46, %v603_v1  ;;  %v4460_v30 = vmov %v4454_v14  ;;  %v4461_v42 = vmov %v4456_v56  ;;  %2444 = vrot.lane.b32.xlu1 %v2443_v17, %s2616_s0  ;;  %v939_v14 = vld [vmem:[%s4419_s4 + $0x90] sm:$0xff]  ;;  %v924_v23 = vld [vmem:[%s4419_s4 + $0x18] sm:$0xff] }
 0x162   :  { %v601_v5 = vsel %vm596_vm3, %v4460_v30, %v588_v60  ;;  %v604_v16 = vsel %vm596_vm3, %v4461_v42, %v591_v13  ;;  %v598_v49 = vsel %vm596_vm3, %v589_v48, %v593_v47  ;;  %v2448_v37 = vpack.i.bf16 %v3511_v18, %v3507_v39  ;;  %v937_v47 = vld [vmem:[%s4419_s4 + $0x80] sm:$0xff]  ;;  %v943_v17 = vld [vmem:[%s4419_s4 + $0xb0] sm:$0xff]  ;;  %v944_v42 = vld [vmem:[%s4419_s4 + $0xb8] sm:$0xff] }
 0x163   :  { %v3565_v46 = vmax.f32 %v3241_v41, %v601_v5  ;;  %v3577_v4 = vmax.f32 %v3266_v38, %v604_v16  ;;  %v599_v41 = vsel %vm596_vm3, %v590_v6, %v594_v32  ;;  %v3586_v11 = vmax.f32 %v3328_v58, %v598_v49  ;;  %v925_v30 = vld [vmem:[%s4419_s4 + $0x20] sm:$0xff]  ;;  %v926_v5 = vld [vmem:[%s4419_s4 + $0x28] sm:$0xff] }
 0x164   :  { %v3589_v48 = vmax.f32 %v3315_v55, %v599_v41  ;;  %v597_v38 = vsel %vm596_vm3, %v588_v60, %v592_v12  ;;  %v600_v61 = vsel %vm596_vm3, %v591_v13, %v595_v50  ;;  %2449 = vrot.lane.b32.xlu0 %v2448_v37, %s2616_s0  ;;  %v2453_v20 = vpack.i.bf16 %v3532_v31, %v3535_v52  ;;  %v921_v13 = vld [vmem:[%s4419_s4] sm:$0xff]  ;;  %v927_v37 = vld [vmem:[%s4419_s4 + $0x30] sm:$0xff]  ;;  %v928_v41 = vld [vmem:[%s4419_s4 + $0x38] sm:$0xff] }
 0x165   :  { %v3603_v58 = vmax.f32 %v3304_v45, %v597_v38  ;;  %v3606_v55 = vmax.f32 %v3347_v54, %v600_v61  ;;  %v2458_v60 = vpack.i.bf16 %v3548_v9, %v3545_v51  ;;  %v2463_v26 = vpack.i.bf16 %v3565_v46, %v3577_v4  ;;  %v938_v54 = vld [vmem:[%s4419_s4 + $0x88] sm:$0xff]  ;;  %v945_v38 = vld [vmem:[%s4419_s4 + $0xc0] sm:$0xff] }
 0x166   :  { %2454 = vrot.lane.b32.xlu1 %v2453_v20, %s2616_s0  ;;  %v2468_v45 = vpack.i.bf16 %v3589_v48, %v3586_v11  ;;  %v2478_v6 = vpack.i.bf16 %v3362_v28, %v3375_v40  ;;  %v2483_v32 = vpack.i.bf16 %v3350_v8, %v3415_v33  ;;  %v2256_v50 = vpack.c.bf16 %v938_v54, %v937_v47  ;;  %v946_v61 = vld [vmem:[%s4419_s4 + $0xc8] sm:$0xff]  ;;  %v931_v54 = vld [vmem:[%s4419_s4 + $0x50] sm:$0xff] }
 0x167   :  { %v2473_v12 = vpack.i.bf16 %v3603_v58, %v3606_v55  ;;  %v2258_v35 = vpack.c.bf16 %v922_v34, %v921_v13  ;;  %v2260_v56 = vpack.c.bf16 %v940_v2, %v939_v14  ;;  %v2262_v24 = vpack.c.bf16 %v924_v23, %v923_v63  ;;  %v932_v13 = vld [vmem:[%s4419_s4 + $0x58] sm:$0xff]  ;;  %v950_v34 = vld [vmem:[%s4419_s4 + $0xe8] sm:$0xff] }
 0x168   :  { %2459 = vrot.lane.b32.xlu0 %v2458_v60, %s2616_s0  ;;  %2257 = vmatprep.subr.bf16.mxu1 %v2256_v50  ;;  %v2264_v1 = vpack.c.bf16 %v942_v29, %v941_v7  ;;  %v2266_v16 = vpack.c.bf16 %v926_v5, %v925_v30  ;;  %v2268_v49 = vpack.c.bf16 %v944_v42, %v943_v17  ;;  %v949_v50 = vld [vmem:[%s4419_s4 + $0xe0] sm:$0xff]  ;;  %v4462_v23 = vlaneseq  ;;  %v951_v5 = vld [vmem:[%s4419_s4 + $0xf0] sm:$0xff]  ;;  %v952_v17 = vld [vmem:[%s4419_s4 + $0xf8] sm:$0xff] }
 0x169   :  { %2259 = vmatpush3.bf16.msra.mxu1 %v2258_v35  ;;  %v2270_v20 = vpack.c.bf16 %v928_v41, %v927_v37  ;;  %v2272_v60 = vpack.c.bf16 %v946_v61, %v945_v38  ;;  %v2278_v14 = vpack.c.bf16 %v932_v13, %v931_v54  ;;  %v2280_v2 = vpack.c.bf16 %v950_v34, %v949_v50  ;;  %v933_v35 = vld [vmem:[%s4419_s4 + $0x60] sm:$0xff]  ;;  %v935_v42 = vld [vmem:[%s4419_s4 + $0x70] sm:$0xff]  ;;  %v936_v41 = vld [vmem:[%s4419_s4 + $0x78] sm:$0xff] }
 0x16a   :  { %2464 = vrot.lane.b32.xlu1 %v2463_v26, %s2616_s0  ;;  %2261 = vmatprep.subr.bf16.mxu1 %v2260_v56  ;;  %v929_v26 = vld [vmem:[%s4419_s4 + $0x40] sm:$0xff]  ;;  %v934_v56 = vld [vmem:[%s4419_s4 + $0x68] sm:$0xff]  ;;  %v3715_v7 = vand.u32 127, %v4462_v23  ;;  %v2284_v37 = vpack.c.bf16 %v952_v17, %v951_v5  ;;  %v2286_v61 = vpack.c.bf16 %v936_v41, %v935_v42 }
 0x16b   :  { %v2282_v63 = vpack.c.bf16 %v934_v56, %v933_v35 }
 0x16c   :  { %2469 = vrot.lane.b32.xlu0 %v2468_v45, %s2616_s0  ;;  %v930_v45 = vld [vmem:[%s4419_s4 + $0x48] sm:$0xff]  ;;  %vm727_vm4 = vcmp.lt.s32.totalorder %v3715_v7, 112  ;;  %vm856_vm5 = vcmp.lt.s32.totalorder %v3715_v7, 96 }
 0x16d   :  { %2263 = vmatpush3.bf16.msra.mxu1 %v2262_v24 }
 0x16e   :  { %2474 = vrot.lane.b32.xlu1 %v2473_v12, %s2616_s0  ;;  %2265 = vmatprep.subr.bf16.mxu1 %v2264_v1  ;;  %v947_v12 = vld [vmem:[%s4419_s4 + $0xd0] sm:$0xff] }
 0x170   :  { %2479 = vrot.lane.b32.xlu0 %v2478_v6, %s2616_s0  ;;  %v948_v6 = vld [vmem:[%s4419_s4 + $0xd8] sm:$0xff] }
 0x171   :  { %2267 = vmatpush3.bf16.msra.mxu1 %v2266_v16  ;;  %v2276_v47 = vpack.c.bf16 %v948_v6, %v947_v12  ;;  %v969_v12 = vld [vmem:[%s4419_s4 + $0x180] sm:$0xff]  ;;  %v970_v6 = vld [vmem:[%s4419_s4 + $0x188] sm:$0xff] }
 0x172   :  { %2484 = vrot.lane.b32.xlu1 %v2483_v32, %s2616_s0  ;;  %2269 = vmatprep.subr.bf16.mxu1 %v2268_v49  ;;  %v2274_v32 = vpack.c.bf16 %v930_v45, %v929_v26  ;;  %v2288_v54 = vpack.c.bf16 %v970_v6, %v969_v12 }
 0x175   :  { %2271 = vmatpush3.bf16.msra.mxu1 %v2270_v20 }
 0x176   :  { %2273 = vmatprep.subr.bf16.mxu1 %v2272_v60 }
 0x179   :  { %2275 = vmatpush3.bf16.msra.mxu1 %v2274_v32 }
 0x17a   :  { %2277 = vmatprep.subr.bf16.mxu1 %v2276_v47 }
 0x17d   :  { %2279 = vmatpush3.bf16.msra.mxu1 %v2278_v14 }
 0x17e   :  { %2281 = vmatprep.subr.bf16.mxu1 %v2280_v2 }
 0x181   :  { %2283 = vmatpush3.bf16.msra.mxu1 %v2282_v63 }
 0x182   :  { %2285 = vmatprep.subr.bf16.mxu1 %v2284_v37 }
 0x185   :  { %2287 = vmatpush3.bf16.msra.mxu1 %v2286_v61 }
 0x186   :  { %2289 = vmatprep.subr.bf16.mxu1 %v2288_v54 }
 0x1b9   :  { %v2410_v29 = vpop.permute.xlu0 %2409 }
 0x1ba   :  { %v2412_v24 = vunpack.i.h.bf16 %v2410_v29  ;;  %v2411_v1 = vunpack.i.l.bf16 %v2410_v29 }
 0x1bc   :  { %v736_v20 = vsel %vm727_vm4, %v2411_v1, %v2412_v24 }
 0x1bd   :  { %v3763_v35 = vmax.f32 %v3269_v44, %v736_v20 }
 0x1c4   :  { %v2420_v30 = vpop.permute.xlu1 %2419 }
 0x1c5   :  { %v2422_v16 = vunpack.i.h.bf16 %v2420_v30  ;;  %v2421_v49 = vunpack.i.l.bf16 %v2420_v30 }
 0x1c7   :  { %v3730_v38 = vpop.permute.xlu0 %2414  ;;  %v737_v60 = vsel %vm727_vm4, %v2421_v49, %v2422_v16 }
 0x1c8   :  { %v2417_v26 = vunpack.i.h.bf16 %v3730_v38  ;;  %v2416_v45 = vunpack.i.l.bf16 %v3730_v38  ;;  %v3747_v47 = vmax.f32 %v3359_v25, %v737_v60 }
 0x1c9   :  { %v3744_v32 = vpop.permute.xlu1 %2424 }
 0x1ca   :  { %v744_v13 = vsel %vm727_vm4, %v2417_v26, %v2411_v1  ;;  %v728_v50 = vsel %vm727_vm4, %v2412_v24, %v2416_v45  ;;  %v2427_v34 = vunpack.i.h.bf16 %v3744_v32  ;;  %v2426_v14 = vunpack.i.l.bf16 %v3744_v32 }
 0x1cb   :  { %v3760_v25 = vmax.f32 %v3383_v19, %v744_v13  ;;  %v3766_v56 = vmax.f32 %v3280_v0, %v728_v50 }
 0x1cc   :  { %v2430_v2 = vpop.permute.xlu0 %2429  ;;  %v745_v63 = vsel %vm727_vm4, %v2427_v34, %v2421_v49  ;;  %v729_v23 = vsel %vm727_vm4, %v2422_v16, %v2426_v14 }
 0x1cd   :  { %v2432_v29 = vunpack.i.h.bf16 %v2430_v2  ;;  %v2431_v19 = vunpack.i.l.bf16 %v2430_v2  ;;  %v2493_v44 = vpack.i.bf16 %v3747_v47, %v3760_v25  ;;  %v2488_v0 = vpack.i.bf16 %v3766_v56, %v3763_v35 }
 0x1ce   :  { %v3776_v24 = vpop.permute.xlu1 %2434  ;;  %v3783_v1 = vmax.f32 %v3405_v27, %v745_v63  ;;  %v3786_v30 = vmax.f32 %v3372_v43, %v729_v23 }
 0x1cf   :  { %v738_v5 = vsel %vm727_vm4, %v2431_v19, %v2432_v29  ;;  %v2437_v17 = vunpack.i.h.bf16 %v3776_v24  ;;  %v2436_v42 = vunpack.i.l.bf16 %v3776_v24  ;;  %2494 = vrot.lane.b32.xlu1 %v2493_v44, %s2617_s28  ;;  %2489 = vrot.lane.b32.xlu0 %v2488_v0, %s2617_s28 }
 0x1d0   :  { %v2440_v16 = vpop.permute.xlu0 %2439  ;;  %v2498_v27 = vpack.i.bf16 %v3783_v1, %v3786_v30  ;;  %v3807_v20 = vmax.f32 %v3425_v57, %v738_v5 }
 0x1d1   :  { %v730_v43 = vsel %vm727_vm4, %v2432_v29, %v2436_v42  ;;  %v746_v49 = vsel %vm727_vm4, %v2437_v17, %v2431_v19  ;;  %v2442_v37 = vunpack.i.h.bf16 %v2440_v16  ;;  %v2441_v41 = vunpack.i.l.bf16 %v2440_v16 }
 0x1d2   :  { %v3810_v60 = vmax.f32 %v3430_v22, %v730_v43  ;;  %v3813_v12 = vmax.f32 %v3446_v21, %v746_v49  ;;  %v754_v38 = vsel %vm727_vm4, %v2436_v42, %v2437_v17 }
 0x1d3   :  { %v3804_v61 = vpop.permute.xlu1 %2444  ;;  %v739_v6 = vsel %vm727_vm4, %v2441_v41, %v2442_v37  ;;  %2499 = vrot.lane.b32.xlu0 %v2498_v27, %s2617_s28  ;;  %v3971_v32 = vmax.f32 %v3449_v10, %v754_v38 }
 0x1d4   :  { %v2447_v54 = vunpack.i.h.bf16 %v3804_v61  ;;  %v4428_v13 = vunpack.i.l.bf16 %v3804_v61  ;;  %v2503_v57 = vpack.i.bf16 %v3810_v60, %v3807_v20  ;;  %v3823_v2 = vmax.f32 %v3466_v3, %v739_v6 }
 0x1d6   :  { %v2450_v50 = vpop.permute.xlu0 %2449  ;;  %v731_v22 = vsel %vm727_vm4, %v2442_v37, %v4428_v13  ;;  %v747_v21 = vsel %vm727_vm4, %v2447_v54, %v2441_v41  ;;  %2504 = vrot.lane.b32.xlu1 %v2503_v57, %s2617_s28  ;;  %v2508_v3 = vpack.i.bf16 %v3823_v2, %v3813_v12 }
 0x1d7   :  { %v2452_v63 = vunpack.i.h.bf16 %v2450_v50  ;;  %v2451_v23 = vunpack.i.l.bf16 %v2450_v50  ;;  %v3839_v19 = vmax.f32 %v3487_v62, %v747_v21  ;;  %v3842_v44 = vmax.f32 %v3469_v53, %v731_v22 }
 0x1d8   :  { %v3833_v29 = vpop.permute.xlu1 %2454  ;;  %2509 = vrot.lane.b32.xlu0 %v2508_v3, %s2617_s28 }
 0x1d9   :  { %v740_v0 = vsel %vm727_vm4, %v2451_v23, %v2452_v63  ;;  %v4427_v5 = vunpack.i.h.bf16 %v3833_v29  ;;  %v4426_v16 = vunpack.i.l.bf16 %v3833_v29  ;;  %v2513_v43 = vpack.i.bf16 %v3839_v19, %v3842_v44 }
 0x1da   :  { %v2460_v27 = vpop.permute.xlu0 %2459  ;;  %v3866_v50 = vmax.f32 %v3507_v39, %v740_v0 }
 0x1db   :  { %v732_v62 = vsel %vm727_vm4, %v2452_v63, %v4426_v16  ;;  %v748_v53 = vsel %vm727_vm4, %v4427_v5, %v2451_v23  ;;  %v2462_v49 = vunpack.i.h.bf16 %v2460_v27  ;;  %v2461_v37 = vunpack.i.l.bf16 %v2460_v27  ;;  %2514 = vrot.lane.b32.xlu1 %v2513_v43, %s2617_s28 }
 0x1dc   :  { %v3859_v41 = vpop.permute.xlu1 %2464  ;;  %v3863_v6 = vmax.f32 %v3532_v31, %v748_v53  ;;  %v3869_v57 = vmax.f32 %v3511_v18, %v732_v62 }
 0x1dd   :  { %v741_v22 = vsel %vm727_vm4, %v2461_v37, %v2462_v49  ;;  %v2467_v21 = vunpack.i.h.bf16 %v3859_v41  ;;  %v2466_v63 = vunpack.i.l.bf16 %v3859_v41 }
 0x1de   :  { %v2470_v23 = vpop.permute.xlu0 %2469  ;;  %v3876_v3 = vmax.f32 %v3545_v51, %v741_v22  ;;  %v2518_v31 = vpack.i.bf16 %v3869_v57, %v3866_v50 }
 0x1df   :  { %v733_v39 = vsel %vm727_vm4, %v2462_v49, %v2466_v63  ;;  %v749_v18 = vsel %vm727_vm4, %v2467_v21, %v2461_v37  ;;  %v2472_v0 = vunpack.i.h.bf16 %v2470_v23  ;;  %v2471_v27 = vunpack.i.l.bf16 %v2470_v23 }
 0x1e0   :  { %v2475_v43 = vpop.permute.xlu1 %2474  ;;  %v2523_v62 = vpack.i.bf16 %v3876_v3, %v3863_v6  ;;  %2519 = vrot.lane.b32.xlu0 %v2518_v31, %s2617_s28  ;;  %v3888_v51 = vmax.f32 %v3565_v46, %v749_v18  ;;  %v3891_v53 = vmax.f32 %v3548_v9, %v733_v39  ;;  %v757_v17 = vsel %vm727_vm4, %v2466_v63, %v2467_v21  ;;  %v954_v21 = vld [vmem:[%s4419_s4 + $0x108] sm:$0xff]  ;;  %v971_v63 = vld [vmem:[%s4419_s4 + $0x190] sm:$0xff] }
 0x1e1   :  { %v742_v49 = vsel %vm727_vm4, %v2471_v27, %v2472_v0  ;;  %v2477_v41 = vunpack.i.h.bf16 %v2475_v43  ;;  %v2476_v22 = vunpack.i.l.bf16 %v2475_v43 }
 0x1e2   :  { %v2480_v37 = vpop.permute.xlu0 %2479  ;;  %2524 = vrot.lane.b32.xlu1 %v2523_v62, %s2617_s28  ;;  %v2528_v23 = vpack.i.bf16 %v3888_v51, %v3891_v53  ;;  %v3904_v16 = vmax.f32 %v3586_v11, %v742_v49 }
 0x1e3   :  { %v734_v31 = vsel %vm727_vm4, %v2472_v0, %v2476_v22  ;;  %v750_v46 = vsel %vm727_vm4, %v2477_v41, %v2471_v27  ;;  %v2482_v18 = vunpack.i.h.bf16 %v2480_v37  ;;  %v2481_v9 = vunpack.i.l.bf16 %v2480_v37 }
 0x1e4   :  { %v2485_v39 = vpop.permute.xlu1 %2484  ;;  %2529 = vrot.lane.b32.xlu0 %v2528_v23, %s2617_s28  ;;  %v3907_v43 = vmax.f32 %v3589_v48, %v734_v31  ;;  %v3910_v62 = vmax.f32 %v3603_v58, %v750_v46  ;;  %v758_v42 = vsel %vm727_vm4, %v2476_v22, %v2477_v41  ;;  %v972_v41 = vld [vmem:[%s4419_s4 + $0x198] sm:$0xff] }
 0x1e5   :  { %v743_v0 = vsel %vm727_vm4, %v2481_v9, %v2482_v18  ;;  %v2487_v5 = vunpack.i.h.bf16 %v2485_v39  ;;  %v2486_v13 = vunpack.i.l.bf16 %v2485_v39 }
 0x1e6   :  { %v2533_v27 = vpack.i.bf16 %v3907_v43, %v3904_v16  ;;  %v3917_v37 = vmax.f32 %v3375_v40, %v743_v0  ;;  %v752_v40 = vsel %vm727_vm4, %v2416_v45, %v2417_v26  ;;  %v4463_v45 = vunpack.i.l.bf16 %v3804_v61 }
 0x1e7   :  { %v735_v11 = vsel %vm727_vm4, %v2482_v18, %v2486_v13  ;;  %v751_v48 = vsel %vm727_vm4, %v2487_v5, %v2481_v9  ;;  %v3996_v61 = vmax.f32 %v3577_v4, %v757_v17 }
 0x1e8   :  { %2534 = vrot.lane.b32.xlu1 %v2533_v27, %s2617_s28  ;;  %v2538_v58 = vpack.i.bf16 %v3917_v37, %v3910_v62  ;;  %v3927_v49 = vmax.f32 %v3350_v8, %v751_v48  ;;  %v3930_v23 = vmax.f32 %v3362_v28, %v735_v11  ;;  %v753_v8 = vsel %vm727_vm4, %v2426_v14, %v2427_v34 }
 0x1e9   :  { %v3949_v28 = vmax.f32 %v3388_v36, %v752_v40  ;;  %v3960_v26 = vmax.f32 %v3408_v59, %v753_v8  ;;  %v755_v36 = vsel %vm727_vm4, %v4463_v45, %v2447_v54  ;;  %v4464_v34 = vunpack.i.h.bf16 %v3833_v29  ;;  %v955_v40 = vld [vmem:[%s4419_s4 + $0x110] sm:$0xff]  ;;  %v974_v8 = vld [vmem:[%s4419_s4 + $0x1a8] sm:$0xff] }
 0x1ea   :  { %2539 = vrot.lane.b32.xlu0 %v2538_v58, %s2617_s28  ;;  %v2543_v31 = vpack.i.bf16 %v3927_v49, %v3930_v23  ;;  %v4465_v14 = vunpack.i.l.bf16 %v3833_v29  ;;  %v3982_v24 = vmax.f32 %v3498_v15, %v755_v36  ;;  %v759_v15 = vsel %vm727_vm4, %v2486_v13, %v2487_v5 }
 0x1eb   :  { %v4003_v54 = vmax.f32 %v3606_v55, %v758_v42  ;;  %v2292_v58 = vpack.c.bf16 %v972_v41, %v971_v63  ;;  %v975_v41 = vld [vmem:[%s4419_s4 + $0x1b0] sm:$0xff] }
 0x1ec   :  { %2544 = vrot.lane.b32.xlu1 %v2543_v31, %s2617_s28  ;;  %v756_v59 = vsel %vm727_vm4, %v4465_v14, %v4464_v34 }
 0x1ed   :  { %v3989_v10 = vmax.f32 %v3535_v52, %v756_v59  ;;  %v4008_v52 = vmax.f32 %v3415_v33, %v759_v15  ;;  %v953_v33 = vld [vmem:[%s4419_s4 + $0x100] sm:$0xff] }
 0x1ee   :  { %840 = vrot.lane.b32.xlu0 %v3949_v28, %s2617_s28  ;;  %v2290_v0 = vpack.c.bf16 %v954_v21, %v953_v33  ;;  %v957_v21 = vld [vmem:[%s4419_s4 + $0x120] sm:$0xff] }
 0x1f0   :  { %842 = vrot.lane.b32.xlu1 %v3960_v26, %s2617_s28 }
 0x1f2   :  { %844 = vrot.lane.b32.xlu0 %v3971_v32, %s2617_s28 }
 0x1f4   :  { %846 = vrot.lane.b32.xlu1 %v3982_v24, %s2617_s28 }
 0x1f6   :  { %848 = vrot.lane.b32.xlu0 %v3989_v10, %s2617_s28 }
 0x1f8   :  { %850 = vrot.lane.b32.xlu1 %v3996_v61, %s2617_s28 }
 0x1fa   :  { %852 = vrot.lane.b32.xlu0 %v4003_v54, %s2617_s28 }
 0x1fc   :  { %854 = vrot.lane.b32.xlu1 %v4008_v52, %s2617_s28 }
 0x241   :  { %v4013_v4 = vpop.permute.xlu1 %2494  ;;  %v4015_v13 = vpop.permute.xlu0 %2489 }
 0x242   :  { %v2496_v29 = vunpack.i.l.bf16 %v4013_v4  ;;  %v2492_v55 = vunpack.i.h.bf16 %v4015_v13  ;;  %v2491_v5 = vunpack.i.l.bf16 %v4015_v13  ;;  %v2497_v27 = vunpack.i.h.bf16 %v4013_v4 }
 0x244   :  { %v873_v22 = vsel %vm856_vm5, %v2496_v29, %v2491_v5  ;;  %v865_v46 = vsel %vm856_vm5, %v2491_v5, %v2492_v55 }
 0x245   :  { %v889_v18 = vmax.f32 %v3760_v25, %v873_v22  ;;  %v4041_v9 = vpop.permute.xlu0 %2499  ;;  %v890_v39 = vmax.f32 %v3763_v35, %v865_v46  ;;  %v956_v25 = vld [vmem:[%s4419_s4 + $0x118] sm:$0xff]  ;;  %v973_v35 = vld [vmem:[%s4419_s4 + $0x1a0] sm:$0xff] }
 0x246   :  { %v2502_v11 = vunpack.i.h.bf16 %v4041_v9  ;;  %v2501_v48 = vunpack.i.l.bf16 %v4041_v9  ;;  %v2294_v42 = vpack.c.bf16 %v956_v25, %v955_v40  ;;  %v2296_v33 = vpack.c.bf16 %v974_v8, %v973_v35  ;;  %v976_v22 = vld [vmem:[%s4419_s4 + $0x1b8] sm:$0xff]  ;;  %v959_v35 = vld [vmem:[%s4419_s4 + $0x130] sm:$0xff] }
 0x247   :  { %1049 = vmatprep.mubr.f32.mxu1 %v890_v39  ;;  %v2300_v25 = vpack.c.bf16 %v976_v22, %v975_v41 }
 0x248   :  { %v4053_v31 = vpop.permute.xlu1 %2504  ;;  %1050 = vmatmul.mubr.f32.vlgmr.msra.gmra.mrb[16].mxu1 %v889_v18  ;;  %v866_v36 = vsel %vm856_vm5, %v2497_v27, %v2501_v48  ;;  %v874_v34 = vsel %vm856_vm5, %v2502_v11, %v2497_v27 }
 0x249   :  { %v2507_v38 = vunpack.i.h.bf16 %v4053_v31  ;;  %v2506_v45 = vunpack.i.l.bf16 %v4053_v31  ;;  %2291 = vmatpush3.bf16.msra.mxu1 %v2290_v0  ;;  %v894_v59 = vmax.f32 %v3747_v47, %v866_v36  ;;  %v893_v17 = vmax.f32 %v3783_v1, %v874_v34  ;;  %v958_v47 = vld [vmem:[%s4419_s4 + $0x128] sm:$0xff]  ;;  %v977_v36 = vld [vmem:[%s4419_s4 + $0x1c0] sm:$0xff] }
 0x24a   :  { %v4071_v14 = vpop.permute.xlu0 %2509  ;;  %2293 = vmatprep.subr.bf16.mxu1 %v2292_v58  ;;  %v2298_v27 = vpack.c.bf16 %v958_v47, %v957_v21  ;;  %v978_v34 = vld [vmem:[%s4419_s4 + $0x1c8] sm:$0xff] }
 0x24b   :  { %v2511_v15 = vunpack.i.l.bf16 %v4071_v14  ;;  %v867_v5 = vsel %vm856_vm5, %v2506_v45, %v2507_v38  ;;  %1054 = vmatprep.mubr.f32.mxu1 %v894_v59  ;;  %v2512_v46 = vunpack.i.h.bf16 %v4071_v14  ;;  %v2304_v47 = vpack.c.bf16 %v978_v34, %v977_v36  ;;  %v963_v36 = vld [vmem:[%s4419_s4 + $0x150] sm:$0xff] }
 0x24c   :  { %v898_v63 = vmax.f32 %v3807_v20, %v867_v5  ;;  %1055 = vmatmul.mubr.f32.gmra.mrb[18].mxu1 %v893_v17 }
 0x24d   :  { %v4086_v1 = vpop.permute.xlu1 %2514  ;;  %v875_v20 = vsel %vm856_vm5, %v2511_v15, %v2506_v45  ;;  %2295 = vmatpush3.bf16.msra.mxu1 %v2294_v42 }
 0x24e   :  { %v2517_v18 = vunpack.i.h.bf16 %v4086_v1  ;;  %v2516_v39 = vunpack.i.l.bf16 %v4086_v1  ;;  %1059 = vmatprep.mubr.f32.mxu1 %v898_v63  ;;  %v897_v0 = vmax.f32 %v3813_v12, %v875_v20  ;;  %2297 = vmatprep.subr.bf16.mxu1 %v2296_v33  ;;  %v960_v12 = vld [vmem:[%s4419_s4 + $0x138] sm:$0xff]  ;;  %v961_v63 = vld [vmem:[%s4419_s4 + $0x140] sm:$0xff] }
 0x24f   :  { %v980_v20 = vld [vmem:[%s4419_s4 + $0x1d8] sm:$0xff] }
 0x250   :  { %v868_v58 = vsel %vm856_vm5, %v2512_v46, %v2516_v39  ;;  %v876_v40 = vsel %vm856_vm5, %v2517_v18, %v2512_v46  ;;  %1060 = vmatmul.mubr.f32.gmra.mrb[20].mxu1 %v897_v0  ;;  %v979_v46 = vld [vmem:[%s4419_s4 + $0x1d0] sm:$0xff] }
 0x251   :  { %v902_v45 = vmax.f32 %v3823_v2, %v868_v58  ;;  %v901_v42 = vmax.f32 %v3839_v19, %v876_v40  ;;  %2299 = vmatpush3.bf16.msra.mxu1 %v2298_v27  ;;  %v2302_v2 = vpack.c.bf16 %v960_v12, %v959_v35  ;;  %v962_v19 = vld [vmem:[%s4419_s4 + $0x148] sm:$0xff] }
 0x252   :  { %v4117_v8 = vpop.permute.xlu0 %2519  ;;  %2301 = vmatprep.subr.bf16.mxu1 %v2300_v25  ;;  %v2306_v25 = vpack.c.bf16 %v962_v19, %v961_v63 }
 0x253   :  { %v2522_v59 = vunpack.i.h.bf16 %v4117_v8  ;;  %v2521_v17 = vunpack.i.l.bf16 %v4117_v8  ;;  %1064 = vmatprep.mubr.f32.mxu1 %v902_v45  ;;  %v2308_v45 = vpack.c.bf16 %v980_v20, %v979_v46 }
 0x254   :  { %v4129_v5 = vpop.permute.xlu1 %2524  ;;  %1065 = vmatmul.mubr.f32.gmra.mrb[22].mxu1 %v901_v42  ;;  %v981_v42 = vld [vmem:[%s4419_s4 + $0x1e0] sm:$0xff] }
 0x255   :  { %v2526_v33 = vunpack.i.l.bf16 %v4129_v5  ;;  %v869_v21 = vsel %vm856_vm5, %v2521_v17, %v2522_v59  ;;  %v2527_v0 = vunpack.i.h.bf16 %v4129_v5  ;;  %2303 = vmatpush3.bf16.msra.mxu1 %v2302_v2  ;;  %v982_v2 = vld [vmem:[%s4419_s4 + $0x1e8] sm:$0xff] }
 0x256   :  { %v4142_v41 = vpop.permute.xlu0 %2529  ;;  %v906_v22 = vmax.f32 %v3866_v50, %v869_v21  ;;  %2305 = vmatprep.subr.bf16.mxu1 %v2304_v47  ;;  %v2312_v20 = vpack.c.bf16 %v982_v2, %v981_v42 }
 0x257   :  { %v2532_v27 = vunpack.i.h.bf16 %v4142_v41  ;;  %v2531_v58 = vunpack.i.l.bf16 %v4142_v41  ;;  %v877_v50 = vsel %vm856_vm5, %v2526_v33, %v2521_v17 }
 0x258   :  { %1069 = vmatprep.mubr.f32.mxu1 %v906_v22  ;;  %v905_v40 = vmax.f32 %v3863_v6, %v877_v50  ;;  %v964_v6 = vld [vmem:[%s4419_s4 + $0x158] sm:$0xff] }
 0x259   :  { %v870_v35 = vsel %vm856_vm5, %v2527_v0, %v2531_v58  ;;  %v878_v12 = vsel %vm856_vm5, %v2532_v27, %v2527_v0  ;;  %2307 = vmatpush3.bf16.msra.mxu1 %v2306_v25  ;;  %v965_v0 = vld [vmem:[%s4419_s4 + $0x160] sm:$0xff]  ;;  %v983_v25 = vld [vmem:[%s4419_s4 + $0x1f0] sm:$0xff] }
 0x25a   :  { %v4173_v34 = vpop.permute.xlu1 %2534  ;;  %v910_v17 = vmax.f32 %v3876_v3, %v870_v35  ;;  %1070 = vmatmul.mubr.f32.gmra.mrb[24].mxu1 %v905_v40  ;;  %v909_v63 = vmax.f32 %v3888_v51, %v878_v12  ;;  %v2310_v3 = vpack.c.bf16 %v964_v6, %v963_v36  ;;  %2309 = vmatprep.subr.bf16.mxu1 %v2308_v45  ;;  %v966_v51 = vld [vmem:[%s4419_s4 + $0x168] sm:$0xff]  ;;  %v984_v35 = vld [vmem:[%s4419_s4 + $0x1f8] sm:$0xff] }
 0x25b   :  { %v2537_v21 = vunpack.i.h.bf16 %v4173_v34  ;;  %v2536_v47 = vunpack.i.l.bf16 %v4173_v34  ;;  %v2314_v42 = vpack.c.bf16 %v966_v51, %v965_v0 }
 0x25c   :  { %v4185_v19 = vpop.permute.xlu0 %2539  ;;  %1074 = vmatprep.mubr.f32.mxu1 %v910_v17 }
 0x25d   :  { %v2541_v22 = vunpack.i.l.bf16 %v4185_v19  ;;  %v871_v46 = vsel %vm856_vm5, %v2536_v47, %v2537_v21  ;;  %v2542_v12 = vunpack.i.h.bf16 %v4185_v19  ;;  %2311 = vmatpush3.bf16.msra.mxu1 %v2310_v3 }
 0x25e   :  { %v4198_v50 = vpop.permute.xlu1 %2544  ;;  %v914_v40 = vmax.f32 %v3904_v16, %v871_v46  ;;  %1075 = vmatmul.mubr.f32.gmra.mrb[26].mxu1 %v909_v63  ;;  %2313 = vmatprep.subr.bf16.mxu1 %v2312_v20  ;;  %v2316_v46 = vpack.c.bf16 %v984_v35, %v983_v25 }
 0x25f   :  { %v2547_v45 = vunpack.i.h.bf16 %v4198_v50  ;;  %v2546_v36 = vunpack.i.l.bf16 %v4198_v50  ;;  %v879_v16 = vsel %vm856_vm5, %v2541_v22, %v2536_v47  ;;  %v967_v47 = vld [vmem:[%s4419_s4 + $0x170] sm:$0xff] }
 0x260   :  { %v841_v6 = vpop.permute.xlu0 %840  ;;  %1079 = vmatprep.mubr.f32.mxu1 %v914_v40  ;;  %v913_v17 = vmax.f32 %v3910_v62, %v879_v16  ;;  %v968_v62 = vld [vmem:[%s4419_s4 + $0x178] sm:$0xff]  ;;  %s2618_s4 = smov 88  }
 0x261   :  { %v872_v2 = vsel %vm856_vm5, %v2542_v12, %v2546_v36  ;;  %v880_v63 = vsel %vm856_vm5, %v2547_v45, %v2542_v12  ;;  %v881_v20 = vsel %vm856_vm5, %v841_v6, %v2496_v29  ;;  %2315 = vmatpush3.bf16.msra.mxu1 %v2314_v42  ;;  %v2318_v40 = vpack.c.bf16 %v968_v62, %v967_v47 }
 0x262   :  { %v918_v3 = vmax.f32 %v3917_v37, %v872_v2  ;;  %1080 = vmatmul.mubr.f32.gmra.mrb[28].mxu1 %v913_v17  ;;  %v917_v0 = vmax.f32 %v3927_v49, %v880_v63  ;;  %v843_v51 = vpop.permute.xlu1 %842  ;;  %2317 = vmatprep.subr.bf16.mxu1 %v2316_v46  ;;  %v857_v25 = vsel %vm856_vm5, %v2492_v55, %v841_v6 }
 0x263   :  { %v892_v37 = vmax.f32 %v3949_v28, %v881_v20  ;;  %v882_v4 = vsel %vm856_vm5, %v843_v51, %v2502_v11  ;;  %v891_v49 = vmax.f32 %v3766_v56, %v857_v25  ;;  %v858_v13 = vsel %vm856_vm5, %v2501_v48, %v843_v51 }
 0x264   :  { %1084 = vmatprep.mubr.f32.mxu1 %v918_v3  ;;  %v845_v29 = vpop.permute.xlu0 %844  ;;  %v896_v55 = vmax.f32 %v3960_v26, %v882_v4  ;;  %v895_v35 = vmax.f32 %v3786_v30, %v858_v13 }
 0x265   :  { %2319 = vmatpush3.bf16.msra.mxu1 %v2318_v40  ;;  %v883_v28 = vsel %vm856_vm5, %v845_v29, %v2511_v15  ;;  %v859_v56 = vsel %vm856_vm5, %v2507_v38, %v845_v29 }
 0x266   :  { %1085 = vmatmul.mubr.f32.gmra.mrb[30].mxu1 %v917_v0  ;;  %v847_v11 = vpop.permute.xlu1 %846  ;;  %v900_v9 = vmax.f32 %v3971_v32, %v883_v28  ;;  %v899_v14 = vmax.f32 %v3810_v60, %v859_v56 }
 0x267   :  { %1154 = vmatprep.mubr.f32.mxu1 %v892_v37  ;;  %v884_v26 = vsel %vm856_vm5, %v847_v11, %v2517_v18  ;;  %v860_v30 = vsel %vm856_vm5, %v2516_v39, %v847_v11 }
 0x268   :  { %v849_v48 = vpop.permute.xlu0 %848  ;;  %v904_v31 = vmax.f32 %v3982_v24, %v884_v26  ;;  %v903_v15 = vmax.f32 %v3842_v44, %v860_v30 }
 0x269   :  { %v885_v32 = vsel %vm856_vm5, %v849_v48, %v2526_v33  ;;  %v861_v60 = vsel %vm856_vm5, %v2522_v59, %v849_v48 }
 0x26a   :  { %1155 = vmatmul.mubr.f32.vlgmr.msra.gmra.mrb[32].mxu1 %v891_v49  ;;  %v851_v38 = vpop.permute.xlu1 %850  ;;  %v908_v1 = vmax.f32 %v3989_v10, %v885_v32  ;;  %v907_v39 = vmax.f32 %v3869_v57, %v861_v60 }
 0x26b   :  { %1159 = vmatprep.mubr.f32.mxu1 %v896_v55  ;;  %v886_v24 = vsel %vm856_vm5, %v851_v38, %v2532_v27  ;;  %v862_v44 = vsel %vm856_vm5, %v2531_v58, %v851_v38 }
 0x26c   :  { %v853_v18 = vpop.permute.xlu0 %852  ;;  %v912_v8 = vmax.f32 %v3996_v61, %v886_v24  ;;  %v911_v5 = vmax.f32 %v3891_v53, %v862_v44 }
 0x26d   :  { %v887_v10 = vsel %vm856_vm5, %v853_v18, %v2541_v22  ;;  %v863_v57 = vsel %vm856_vm5, %v2537_v21, %v853_v18 }
 0x26e   :  { %1160 = vmatmul.mubr.f32.gmra.mrb[34].mxu1 %v895_v35  ;;  %v855_v59 = vpop.permute.xlu1 %854  ;;  %v916_v33 = vmax.f32 %v4003_v54, %v887_v10  ;;  %v915_v41 = vmax.f32 %v3907_v43, %v863_v57 }
 0x26f   :  { %1164 = vmatprep.mubr.f32.mxu1 %v900_v9  ;;  %v888_v61 = vsel %vm856_vm5, %v855_v59, %v2547_v45  ;;  %v864_v53 = vsel %vm856_vm5, %v2546_v36, %v855_v59 }
 0x270   :  { %v920_v27 = vmax.f32 %v4008_v52, %v888_v61  ;;  %v919_v54 = vmax.f32 %v3930_v23, %v864_v53 }
 0x272   :  { %1165 = vmatmul.mubr.f32.gmra.mrb[36].mxu1 %v899_v14 }
 0x273   :  { %1169 = vmatprep.mubr.f32.mxu1 %v904_v31 }
 0x276   :  { %1170 = vmatmul.mubr.f32.gmra.mrb[38].mxu1 %v903_v15 }
 0x277   :  { %1174 = vmatprep.mubr.f32.mxu1 %v908_v1 }
 0x27a   :  { %1175 = vmatmul.mubr.f32.gmra.mrb[40].mxu1 %v907_v39 }
 0x27b   :  { %1179 = vmatprep.mubr.f32.mxu1 %v912_v8 }
 0x27e   :  { %1180 = vmatmul.mubr.f32.gmra.mrb[42].mxu1 %v911_v5 }
 0x27f   :  { %1184 = vmatprep.mubr.f32.mxu1 %v916_v33 }
 0x282   :  { %1185 = vmatmul.mubr.f32.gmra.mrb[44].mxu1 %v915_v41  ;;  %v1208_v41 = vld [vmem:[#allocation3 + $0x60] sm:$0xff] }
 0x283   :  { %1189 = vmatprep.mubr.f32.mxu1 %v920_v27  ;;  %2082 = vmatprep.mubr.msk.f32.mxu0 %vm1252_vm6, %v1208_v41  ;;  %v1578_v41 = vld [vmem:[#allocation3 + $0xd0] sm:$0xff] }
 0x286   :  { %1190 = vmatmul.mubr.f32.gmra.mrb[46].mxu1 %v919_v54 }
 0x31b   :  { %v1926_v58 = vpop.f32.mrb[16].mxu1 }
 0x31c   :  { %v1927_v34 = vpop.f32.mrb[17].mxu1 }
 0x31d   :  { %v1928_v21 = vadd.f32 %v1927_v34, %v1926_v58  ;;  %v1218_v34 = vld [vmem:[#allocation3 + $0xb0] sm:$0xff] }
 0x31e   :  { %2097 = vmatprep.mubr.msk.f32.mxu1 %vm1252_vm6, %v1218_v34  ;;  %v1583_v34 = vld [vmem:[#allocation3 + $0xf8] sm:$0xff] }
 0x31f   :  { %v1929_v19 = vpop.f32.mrb[18].mxu1 }
 0x320   :  { %v1930_v22 = vpop.f32.mrb[19].mxu1 }
 0x321   :  { %v1931_v12 = vadd.f32 %v1930_v22, %v1929_v19  ;;  %v2620_v19 = vmov 0  }
 0x322   :  { %2588 = vset.pattern.permute.xlu0 %v2620_v19  ;;  %v1585_v19 = vld [vmem:[#allocation3 + $0x108] sm:$0xff] }
 0x323   :  { %v1932_v45 = vpop.f32.mrb[20].mxu1 }
 0x324   :  { %v1933_v43 = vpop.f32.mrb[21].mxu1 }
 0x325   :  { %v1934_v16 = vadd.f32 %v1933_v43, %v1932_v45 }
 0x327   :  { %v1935_v50 = vpop.f32.mrb[22].mxu1 }
 0x328   :  { %v1936_v6 = vpop.f32.mrb[23].mxu1 }
 0x329   :  { %v1937_v7 = vadd.f32 %v1936_v6, %v1935_v50 }
 0x32d   :  { %v1938_v36 = vpop.f32.mrb[24].mxu1 }
 0x32e   :  { %v1939_v17 = vpop.f32.mrb[25].mxu1 }
 0x32f   :  { %v1940_v52 = vadd.f32 %v1939_v17, %v1938_v36 }
 0x331   :  { %v1941_v42 = vpop.f32.mrb[26].mxu1 }
 0x332   :  { %v1942_v2 = vpop.f32.mrb[27].mxu1 }
 0x333   :  { %v1943_v63 = vadd.f32 %v1942_v2, %v1941_v42 }
 0x335   :  { %v1944_v23 = vpop.f32.mrb[28].mxu1 }
 0x336   :  { %v1945_v46 = vpop.f32.mrb[29].mxu1 }
 0x337   :  { %v1946_v47 = vadd.f32 %v1945_v46, %v1944_v23 }
 0x339   :  { %v1947_v62 = vpop.f32.mrb[30].mxu1 }
 0x33a   :  { %v1948_v3 = vpop.f32.mrb[31].mxu1 }
 0x33b   :  { %v1949_v20 = vadd.f32 %v1948_v3, %v1947_v62  ;;  %v1219_v62 = vld [vmem:[#allocation3 + $0xb8] sm:$0xff]  ;;  %v1210_v3 = vld [vmem:[#allocation3 + $0x70] sm:$0xff] }
 0x33d   :  { %v1982_v0 = vpop.f32.mrb[32].mxu1 }
 0x33e   :  { %v1983_v51 = vpop.f32.mrb[33].mxu1 }
 0x33f   :  { %v1984_v40 = vadd.f32 %v1983_v51, %v1982_v0  ;;  %v1212_v0 = vld [vmem:[#allocation3 + $0x80] sm:$0xff] }
 0x341   :  { %v1157_v25 = vadd.f32 %v1984_v40, %v1928_v21  ;;  %v1985_v37 = vpop.f32.mrb[34].mxu1  ;;  %v1893_v21 = vld [vmem:[#allocation2] ss:$0 sm:$0xff]  ;;  %v1213_v40 = vld [vmem:[#allocation3 + $0x88] sm:$0xff] }
 0x342   :  { %v1986_v4 = vpop.f32.mrb[35].mxu1 }
 0x343   :  { %v1987_v29 = vadd.f32 %v1986_v4, %v1985_v37 }
 0x345   :  { %v1162_v49 = vadd.f32 %v1987_v29, %v1931_v12  ;;  %v1988_v13 = vpop.f32.mrb[36].mxu1  ;;  %v1215_v29 = vld [vmem:[#allocation3 + $0x98] sm:$0xff] }
 0x346   :  { %v1989_v55 = vpop.f32.mrb[37].mxu1 }
 0x347   :  { %v1990_v28 = vadd.f32 %v1989_v55, %v1988_v13  ;;  %v2548_v11 = vpack.i.bf16 %v1162_v49, %v1157_v25  ;;  %v4311_v35 = vpack.c.bf16 %v1162_v49, %v1157_v25  ;;  %v1214_v25 = vld [vmem:[#allocation3 + $0x90] sm:$0xff]  ;;  %v1216_v49 = vld [vmem:[#allocation3 + $0xa0] sm:$0xff] }
 0x349   :  { %v1167_v56 = vadd.f32 %v1990_v28, %v1934_v16  ;;  %v1991_v9 = vpop.f32.mrb[38].mxu1  ;;  %2549 = vrot.lane.b32.xlu0 %v2548_v11, %s2618_s4  ;;  %v1217_v28 = vld [vmem:[#allocation3 + $0xa8] sm:$0xff] }
 0x34a   :  { %v1992_v26 = vpop.f32.mrb[39].mxu1 }
 0x34b   :  { %v1993_v48 = vadd.f32 %v1992_v26, %v1991_v9  ;;  %v1196_v26 = vld [vmem:[#allocation3 + $0x8] sm:$0xff] }
 0x34d   :  { %v1172_v14 = vadd.f32 %v1993_v48, %v1937_v7  ;;  %v1994_v30 = vpop.f32.mrb[40].mxu1  ;;  %v1197_v48 = vld [vmem:[#allocation3 + $0x10] sm:$0xff] }
 0x34e   :  { %v1995_v31 = vpop.f32.mrb[41].mxu1 }
 0x34f   :  { %v1996_v32 = vadd.f32 %v1995_v31, %v1994_v30  ;;  %v2553_v38 = vpack.i.bf16 %v1172_v14, %v1167_v56  ;;  %v4314_v15 = vpack.c.bf16 %v1172_v14, %v1167_v56 }
 0x351   :  { %v1177_v60 = vadd.f32 %v1996_v32, %v1940_v52  ;;  %v1997_v1 = vpop.f32.mrb[42].mxu1  ;;  %2554 = vrot.lane.b32.xlu1 %v2553_v38, %s2618_s4 }
 0x352   :  { %v1998_v24 = vpop.f32.mrb[43].mxu1 }
 0x353   :  { %v1999_v18 = vadd.f32 %v1998_v24, %v1997_v1 }
 0x355   :  { %v1182_v39 = vadd.f32 %v1999_v18, %v1943_v63  ;;  %v2000_v44 = vpop.f32.mrb[44].mxu1  ;;  %v1200_v18 = vld [vmem:[#allocation3 + $0x28] sm:$0xff] }
 0x356   :  { %v2001_v8 = vpop.f32.mrb[45].mxu1 }
 0x357   :  { %v2002_v10 = vadd.f32 %v2001_v8, %v2000_v44  ;;  %v2558_v59 = vpack.i.bf16 %v1182_v39, %v1177_v60  ;;  %v4317_v5 = vpack.c.bf16 %v1182_v39, %v1177_v60  ;;  %v1201_v39 = vld [vmem:[#allocation3 + $0x30] sm:$0xff]  ;;  %v1202_v8 = vld [vmem:[#allocation3 + $0x38] sm:$0xff] }
 0x359   :  { %v1187_v57 = vadd.f32 %v2002_v10, %v1946_v47  ;;  %v2003_v33 = vpop.f32.mrb[46].mxu1  ;;  %2559 = vrot.lane.b32.xlu0 %v2558_v59, %s2618_s4  ;;  %v1209_v47 = vld [vmem:[#allocation3 + $0x68] sm:$0xff]  ;;  %v1203_v10 = vld [vmem:[#allocation3 + $0x40] sm:$0xff] }
 0x35a   :  { %v2004_v61 = vpop.f32.mrb[47].mxu1 }
 0x35b   :  { %v2005_v53 = vadd.f32 %v2004_v61, %v2003_v33  ;;  %v1576_v33 = vld [vmem:[#allocation3 + $0xc0] sm:$0xff]  ;;  %v1577_v61 = vld [vmem:[#allocation3 + $0xc8] sm:$0xff] }
 0x35d   :  { %v1192_v27 = vadd.f32 %v2005_v53, %v1949_v20  ;;  %2569 = vrot.lane.b32.xlu0 %v2548_v11, %s2619_s7  ;;  %v1211_v20 = vld [vmem:[#allocation3 + $0x78] sm:$0xff]  ;;  %v1195_v11 = vld [vmem:[#allocation3] sm:$0xff] }
 0x35e   :  { %v1579_v53 = vld [vmem:[#allocation3 + $0xd8] sm:$0xff] }
 0x35f   :  { %v2563_v54 = vpack.i.bf16 %v1192_v27, %v1187_v57  ;;  %v4321_v58 = vpack.c.bf16 %v1192_v27, %v1187_v57  ;;  %v1206_v57 = vld [vmem:[#allocation3 + $0x58] sm:$0xff]  ;;  %v1580_v27 = vld [vmem:[#allocation3 + $0xe0] sm:$0xff] }
 0x361   :  { %2564 = vrot.lane.b32.xlu1 %v2563_v54, %s2618_s4  ;;  %2579 = vrot.lane.b32.xlu0 %v2558_v59, %s2619_s7  ;;  %v1204_v59 = vld [vmem:[#allocation3 + $0x48] sm:$0xff] }
 0x365   :  { %2574 = vrot.lane.b32.xlu1 %v2553_v38, %s2619_s7  ;;  %1792 = vperm.xlu0 %2588, %v1893_v21   ;;  %v1198_v38 = vld [vmem:[#allocation3 + $0x18] sm:$0xff]  ;;  %v1584_v21 = vld [vmem:[#allocation3 + $0x100] sm:$0xff] }
 0x369   :  { %2584 = vrot.lane.b32.xlu1 %v2563_v54, %s2619_s7  ;;  %v1581_v54 = vld [vmem:[#allocation3 + $0xe8] sm:$0xff] }
 0x3bb   :  { %v2550_v22 = vpop.permute.xlu0 %2549 }
 0x3bc   :  { %v2552_v12 = vunpack.i.h.bf16 %v2550_v22  ;;  %v2551_v45 = vunpack.i.l.bf16 %v2550_v22  ;;  %v1586_v22 = vld [vmem:[#allocation3 + $0x110] sm:$0xff] }
 0x3be   :  { %v2320_v43 = vpack.c.bf16 %v2552_v12, %v2551_v45  ;;  %v1587_v12 = vld [vmem:[#allocation3 + $0x118] sm:$0xff] }
 0x3c0   :  { %2321 = vmatprep.subr.bf16.mxu0 %v2320_v43  ;;  %2368 = vmatprep.subr.bf16.mxu1 %v2320_v43 }
 0x3c1   :  { %2323 = vmatpush3.bf16.msra.mxu0 %v2320_v43  ;;  %2372 = vmatpush3.bf16.msra.mxu1 %v2320_v43 }
 0x3c3   :  { %v2555_v16 = vpop.permute.xlu1 %2554 }
 0x3c4   :  { %v2557_v50 = vunpack.i.h.bf16 %v2555_v16  ;;  %v2556_v6 = vunpack.i.l.bf16 %v2555_v16 }
 0x3c6   :  { %v2324_v7 = vpack.c.bf16 %v2557_v50, %v2556_v6 }
 0x3c8   :  { %2325 = vmatprep.subr.bf16.mxu0 %v2324_v7  ;;  %2369 = vmatprep.subr.bf16.mxu1 %v2324_v7 }
 0x3c9   :  { %2327 = vmatpush3.bf16.msra.mxu0 %v2324_v7  ;;  %2373 = vmatpush3.bf16.msra.mxu1 %v2324_v7 }
 0x3cb   :  { %v2560_v36 = vpop.permute.xlu0 %2559 }
 0x3cc   :  { %v2562_v17 = vunpack.i.h.bf16 %v2560_v36  ;;  %v2561_v52 = vunpack.i.l.bf16 %v2560_v36 }
 0x3ce   :  { %v2328_v42 = vpack.c.bf16 %v2562_v17, %v2561_v52 }
 0x3cf   :  { %v2570_v51 = vpop.permute.xlu0 %2569 }
 0x3d0   :  { %2329 = vmatprep.subr.bf16.mxu0 %v2328_v42  ;;  %2370 = vmatprep.subr.bf16.mxu1 %v2328_v42  ;;  %v2572_v37 = vunpack.i.h.bf16 %v2570_v51  ;;  %v2571_v4 = vunpack.i.l.bf16 %v2570_v51 }
 0x3d1   :  { %2331 = vmatpush3.bf16.msra.mxu0 %v2328_v42  ;;  %2374 = vmatpush3.bf16.msra.mxu1 %v2328_v42 }
 0x3d2   :  { %v2352_v13 = vpack.c.bf16 %v2572_v37, %v2571_v4 }
 0x3d3   :  { %v2565_v2 = vpop.permute.xlu1 %2564  ;;  %v2580_v9 = vpop.permute.xlu0 %2579 }
 0x3d4   :  { %v2567_v63 = vunpack.i.h.bf16 %v2565_v2  ;;  %v2566_v23 = vunpack.i.l.bf16 %v2565_v2  ;;  %v2582_v14 = vunpack.i.h.bf16 %v2580_v9  ;;  %v2581_v30 = vunpack.i.l.bf16 %v2580_v9 }
 0x3d6   :  { %v2332_v46 = vpack.c.bf16 %v2567_v63, %v2566_v23  ;;  %v2360_v60 = vpack.c.bf16 %v2582_v14, %v2581_v30 }
 0x3d7   :  { %v2575_v55 = vpop.permute.xlu1 %2574 }
 0x3d8   :  { %2333 = vmatprep.subr.bf16.mxu0 %v2332_v46  ;;  %2371 = vmatprep.subr.bf16.mxu1 %v2332_v46  ;;  %v2576_v56 = vunpack.i.l.bf16 %v2575_v55 }
 0x3d9   :  { %2335 = vmatpush3.bf16.msra.mxu0 %v2332_v46  ;;  %2375 = vmatpush3.bf16.msra.mxu1 %v2332_v46 }
 0x3da   :  { %2337 = vmatprep.subr.bf16.mxu0 %v4311_v35 }
 0x3db   :  { %v2585_v32 = vpop.permute.xlu1 %2584 }
 0x3dc   :  { %2083 = vmatmul.mubr.msk.f32.vlgmr.msra.gmra.mrb[16].mxu0 %vm1252_vm6, %v1209_v47  ;;  %2098 = vmatmul.mubr.msk.f32.vlgmr.msra.gmra.mrb[48].mxu1 %vm1252_vm6, %v1219_v62  ;;  %v2587_v1 = vunpack.i.h.bf16 %v2585_v32  ;;  %v2586_v24 = vunpack.i.l.bf16 %v2585_v32 }
 0x3dd   :  { %2339 = vmatpush3.bf16.msra.mxu0 %v4311_v35  ;;  %2085 = vmatprep.mubr.msk.f32.mxu0 %vm1252_vm6, %v1210_v3  ;;  %v2577_v35 = vunpack.i.h.bf16 %v2575_v55 }
 0x3de   :  { %2341 = vmatprep.subr.bf16.mxu0 %v4314_v15  ;;  %v2364_v44 = vpack.c.bf16 %v2587_v1, %v2586_v24 }
 0x3df   :  { %v2356_v31 = vpack.c.bf16 %v2577_v35, %v2576_v56 }
 0x3e0   :  { %2086 = vmatmul.mubr.msk.f32.gmra.mrb[18].mxu0 %vm1252_vm6, %v1211_v20 }
 0x3e1   :  { %2343 = vmatpush3.bf16.msra.mxu0 %v4314_v15  ;;  %2088 = vmatprep.mubr.msk.f32.mxu0 %vm1252_vm6, %v1212_v0  ;;  %v1199_v15 = vld [vmem:[#allocation3 + $0x20] sm:$0xff] }
 0x3e2   :  { %2345 = vmatprep.subr.bf16.mxu0 %v4317_v5 }
 0x3e4   :  { %2089 = vmatmul.mubr.msk.f32.gmra.mrb[20].mxu0 %vm1252_vm6, %v1213_v40  ;;  %v1793_v16 = vpop.permute.xlu0 %1792 }
 0x3e5   :  { %2347 = vmatpush3.bf16.msra.mxu0 %v4317_v5  ;;  %2091 = vmatprep.mubr.msk.f32.mxu0 %vm1252_vm6, %v1214_v25  ;;  %v1205_v5 = vld [vmem:[#allocation3 + $0x50] sm:$0xff] }
 0x3e6   :  { %2349 = vmatprep.subr.bf16.mxu0 %v4321_v58 }
 0x3e8   :  { %2092 = vmatmul.mubr.msk.f32.gmra.mrb[22].mxu0 %vm1252_vm6, %v1215_v29 }
 0x3e9   :  { %2351 = vmatpush3.bf16.msra.mxu0 %v4321_v58  ;;  %2094 = vmatprep.mubr.msk.f32.mxu0 %vm1252_vm6, %v1216_v49  ;;  %v1582_v58 = vld [vmem:[#allocation3 + $0xf0] sm:$0xff] }
 0x3ea   :  { %2353 = vmatprep.subr.bf16.mxu0 %v2352_v13 }
 0x3ec   :  { %2095 = vmatmul.mubr.msk.f32.gmra.mrb[24].mxu0 %vm1252_vm6, %v1217_v28 }
 0x3ed   :  { %2116 = vmatprep.mubr.msk.f32.mxu0 %vm1252_vm6, %v1195_v11 }
 0x3f0   :  { %2117 = vmatmul.mubr.msk.f32.vlgmr.msra.gmra.mrb[16].mxu0 %vm1252_vm6, %v1196_v26 }
 0x3f1   :  { %2355 = vmatpush3.bf16.msra.mxu0 %v2352_v13  ;;  %2119 = vmatprep.mubr.msk.f32.mxu0 %vm1252_vm6, %v1197_v48 }
 0x3f2   :  { %2357 = vmatprep.subr.bf16.mxu0 %v2356_v31 }
 0x3f4   :  { %2120 = vmatmul.mubr.msk.f32.gmra.mrb[18].mxu0 %vm1252_vm6, %v1198_v38 }
 0x3f5   :  { %2359 = vmatpush3.bf16.msra.mxu0 %v2356_v31  ;;  %2122 = vmatprep.mubr.msk.f32.mxu0 %vm1252_vm6, %v1199_v15 }
 0x3f6   :  { %2361 = vmatprep.subr.bf16.mxu0 %v2360_v60 }
 0x3f8   :  { %2123 = vmatmul.mubr.msk.f32.gmra.mrb[20].mxu0 %vm1252_vm6, %v1200_v18 }
 0x3f9   :  { %2363 = vmatpush3.bf16.msra.mxu0 %v2360_v60  ;;  %2125 = vmatprep.mubr.msk.f32.mxu0 %vm1252_vm6, %v1201_v39 }
 0x3fa   :  { %2365 = vmatprep.subr.bf16.mxu0 %v2364_v44 }
 0x3fc   :  { %2126 = vmatmul.mubr.msk.f32.gmra.mrb[22].mxu0 %vm1252_vm6, %v1202_v8 }
 0x3fd   :  { %2367 = vmatpush3.bf16.msra.mxu0 %v2364_v44  ;;  %2128 = vmatprep.mubr.msk.f32.mxu0 %vm1252_vm6, %v1203_v10 }
 0x400   :  { %2129 = vmatmul.mubr.msk.f32.gmra.mrb[24].mxu0 %vm1252_vm6, %v1204_v59 }
 0x401   :  { %2131 = vmatprep.mubr.msk.f32.mxu0 %vm1252_vm6, %v1205_v5 }
 0x404   :  { %2132 = vmatmul.mubr.msk.f32.gmra.mrb[26].mxu0 %vm1252_vm6, %v1206_v57 }
 0x405   :  { %2150 = vmatprep.mubr.msk.f32.mxu0 %vm1252_vm6, %v1576_v33 }
 0x408   :  { %2151 = vmatmul.mubr.msk.f32.vlgmr.msra.gmra.mrb[16].mxu0 %vm1252_vm6, %v1577_v61 }
 0x409   :  { %2153 = vmatprep.mubr.msk.f32.mxu0 %vm1252_vm6, %v1578_v41 }
 0x40c   :  { %2154 = vmatmul.mubr.msk.f32.gmra.mrb[18].mxu0 %vm1252_vm6, %v1579_v53 }
 0x40d   :  { %2156 = vmatprep.mubr.msk.f32.mxu0 %vm1252_vm6, %v1580_v27 }
 0x410   :  { %2157 = vmatmul.mubr.msk.f32.gmra.mrb[20].mxu0 %vm1252_vm6, %v1581_v54 }
 0x411   :  { %2159 = vmatprep.mubr.msk.f32.mxu0 %vm1252_vm6, %v1582_v58 }
 0x414   :  { %2160 = vmatmul.mubr.msk.f32.gmra.mrb[22].mxu0 %vm1252_vm6, %v1583_v34 }
 0x415   :  { %2162 = vmatprep.mubr.msk.f32.mxu0 %vm1252_vm6, %v1584_v21 }
 0x418   :  { %2163 = vmatmul.mubr.msk.f32.gmra.mrb[24].mxu0 %vm1252_vm6, %v1585_v19 }
 0x419   :  { %2165 = vmatprep.mubr.msk.f32.mxu0 %vm1252_vm6, %v1586_v22 }
 0x41c   :  { %2166 = vmatmul.mubr.msk.f32.gmra.mrb[26].mxu0 %vm1252_vm6, %v1587_v12 }
 0x4af   :  { %v2099_v45 = vpop.f32.mrb[48].mxu1 }
 0x4b0   :  { %v1405_v43 = vpop.f32.mrb[49].mxu1 }
 0x4db   :  { %v2152_v50 = vpop.f32.mrb[16].mxu0 }
 0x4dc   :  { %v1796_v6 = vadd.f32 %v2152_v50, %v1793_v16  ;;  %v1714_v7 = vpop.f32.mrb[17].mxu0 }
 0x4dd   :  { %v1795_v36 = vadd.f32 %v1793_v16, %v1714_v7 }
 0x4de   :  { %v1809_v17 = vsel %vm1807_vm7, %v1796_v6, 0.0 }
 0x4df   :  { %1821 = vst [vmem:[%s4421_s6 + $0x8] sm:$0xff] %v1809_v17  ;;  %v1808_v52 = vsel %vm1807_vm7, %v1795_v36, 0.0  ;;  %v2155_v42 = vpop.f32.mrb[18].mxu0 }
 0x4e0   :  { %1820 = vst [vmem:[%s4421_s6] sm:$0xff] %v1808_v52  ;;  %v1798_v2 = vadd.f32 %v2155_v42, %v1793_v16  ;;  %v1724_v63 = vpop.f32.mrb[19].mxu0 }
 0x4e1   :  { %v1797_v23 = vadd.f32 %v1793_v16, %v1724_v63 }
 0x4e2   :  { %v1811_v46 = vsel %vm1807_vm7, %v1798_v2, 0.0 }
 0x4e3   :  { %1823 = vst [vmem:[%s4421_s6 + $0x18] sm:$0xff] %v1811_v46  ;;  %v1810_v47 = vsel %vm1807_vm7, %v1797_v23, 0.0  ;;  %v2158_v62 = vpop.f32.mrb[20].mxu0 }
 0x4e4   :  { %1822 = vst [vmem:[%s4421_s6 + $0x10] sm:$0xff] %v1810_v47  ;;  %v1800_v3 = vadd.f32 %v2158_v62, %v1793_v16  ;;  %v1734_v20 = vpop.f32.mrb[21].mxu0 }
 0x4e5   :  { %v1799_v0 = vadd.f32 %v1793_v16, %v1734_v20 }
 0x4e6   :  { %v1813_v51 = vsel %vm1807_vm7, %v1800_v3, 0.0 }
 0x4e7   :  { %1825 = vst [vmem:[%s4421_s6 + $0x28] sm:$0xff] %v1813_v51  ;;  %v1812_v40 = vsel %vm1807_vm7, %v1799_v0, 0.0  ;;  %v2161_v25 = vpop.f32.mrb[22].mxu0 }
 0x4e8   :  { %1824 = vst [vmem:[%s4421_s6 + $0x20] sm:$0xff] %v1812_v40  ;;  %v1802_v37 = vadd.f32 %v2161_v25, %v1793_v16  ;;  %v1744_v4 = vpop.f32.mrb[23].mxu0 }
 0x4e9   :  { %v1801_v29 = vadd.f32 %v1793_v16, %v1744_v4 }
 0x4ea   :  { %v1815_v49 = vsel %vm1807_vm7, %v1802_v37, 0.0 }
 0x4eb   :  { %1827 = vst [vmem:[%s4421_s6 + $0x38] sm:$0xff] %v1815_v49  ;;  %v1814_v13 = vsel %vm1807_vm7, %v1801_v29, 0.0  ;;  %v2164_v55 = vpop.f32.mrb[24].mxu0 }
 0x4ec   :  { %1826 = vst [vmem:[%s4421_s6 + $0x30] sm:$0xff] %v1814_v13  ;;  %v1804_v28 = vadd.f32 %v2164_v55, %v1793_v16  ;;  %v1754_v11 = vpop.f32.mrb[25].mxu0 }
 0x4ed   :  { %v1803_v35 = vadd.f32 %v1793_v16, %v1754_v11 }
 0x4ee   :  { %v1817_v56 = vsel %vm1807_vm7, %v1804_v28, 0.0 }
 0x4ef   :  { %1829 = vst [vmem:[%s4421_s6 + $0x48] sm:$0xff] %v1817_v56  ;;  %v1816_v9 = vsel %vm1807_vm7, %v1803_v35, 0.0  ;;  %v2167_v26 = vpop.f32.mrb[26].mxu0 }
 0x4f0   :  { %1828 = vst [vmem:[%s4421_s6 + $0x40] sm:$0xff] %v1816_v9  ;;  %v2376_v48 = vadd.f32 %v2167_v26, %v2099_v45  ;;  %v1764_v14 = vpop.f32.mrb[27].mxu0 }
 0x4f1   :  { %v2377_v30 = vadd.f32 %v1764_v14, %v1405_v43 }
 0x4f2   :  { %v1806_v31 = vadd.f32 %v2376_v48, %v1793_v16 }
 0x4f3   :  { %v1805_v32 = vadd.f32 %v2377_v30, %v1793_v16 }
 0x4f4   :  { %v1819_v38 = vsel %vm1807_vm7, %v1806_v31, 0.0 }
 0x4f5   :  { %1831 = vst [vmem:[%s4421_s6 + $0x58] sm:$0xff] %v1819_v38  ;;  %v1818_v15 = vsel %vm1807_vm7, %v1805_v32, 0.0 }
 0x4f6   :  { %1830 = vst [vmem:[%s4421_s6 + $0x50] sm:$0xff] %v1818_v15 }
 0x4f7   :  { %1836 = vsyncpa [#allocation4], 1 }

</bundles_post_ra>
